<compile_context>
chip_gen: v7x
topology: tpu7x:2x2x1
jax: 0.10.0
libtpu: 0.0.40
codegen_flags: <defaults>
</compile_context>

<pallas_src>
import jax
import jax.numpy as jnp
from jax.experimental import pallas as pl
from jax.experimental.pallas import tpu as pltpu

LN_EPS = 1e-5  # nn.LayerNorm default


def token_dur_model_forward(x, num_tokens, ref_length):
    # TODO(synk): token_dur_model is an external module whose definition is not
    # provided; its forward(x, num_tokens, ref_length) is modeled as identity
    # returning a (B, T, dim) tensor.
    del num_tokens, ref_length
    return x


def _round_up(v, m):
    return ((v + m - 1) // m) * m


def _silu(x):
    return x * jax.nn.sigmoid(x)          # sigmoid -> lax.logistic -> EUP


def _layernorm(x, gamma, beta):
    # Variance as E[x^2] - mean^2: both cross-lane reduces issue together.
    mean = jnp.mean(x, axis=-1, keepdims=True)
    ex2 = jnp.mean(x * x, axis=-1, keepdims=True)
    inv = jax.lax.rsqrt(ex2 - mean * mean + LN_EPS)   # rsqrt -> EUP slot
    return (x - mean) * inv * gamma + beta


def phn_dur_kernel(x_ref, w1_ref, v1_ref, w2_ref, v2_ref, o_ref):
    x = x_ref[...]                          # (TM, D) bf16 (dominant HBM stream)
    v1 = v1_ref[...]                        # (3, D4)  f32: [b1; ln1_g; ln1_b]
    v2 = v2_ref[...]                        # (3, D16) f32: [b2; w3'; c @ [2,0]]

    # Linear(D, D/4) + SiLU + LayerNorm(D/4)   (bf16 MXU, f32 accumulation)
    h = jnp.dot(x, w1_ref[...], preferred_element_type=jnp.float32)
    h = _silu(h + v1[0:1, :])
    h = _layernorm(h, v1[1:2, :], v1[2:3, :])
    # Dropout(0.5): identity at inference.

    # bf16 intermediate: halves the (TM, D4) round-trip, native MXU for matmul2.
    h = h.astype(jnp.bfloat16)

    # Linear(D/4, D/16) + SiLU + LayerNorm(D/16, affine folded below)
    g = jnp.dot(h, w2_ref[...], preferred_element_type=jnp.float32)
    g = _silu(g + v2[0:1, :])
    mean = jnp.mean(g, axis=-1, keepdims=True)
    ex2 = jnp.mean(g * g, axis=-1, keepdims=True)
    inv = jax.lax.rsqrt(ex2 - mean * mean + LN_EPS)
    gn = (g - mean) * inv
    # Dropout(0.5): identity at inference.

    # LN2 affine + Linear(D/16, 1) folded:  out = gn @ (g2*w3) + (be2.w3 + b3).
    # Computed as w3' . gn^T (contract last dims) so the per-row scalars come
    # out lane-dense as (1, TM): no masked single-lane stores and no explicit
    # (TM, D16) transpose is materialized (q.k^T-style MXU contraction).
    w3p = v2[1:2, :]                                          # (1, D16)
    o_row = jax.lax.dot_general(
        w3p, gn, (((1,), (1,)), ((), ())),
        preferred_element_type=jnp.float32)                   # (1, TM)
    o_ref[...] = (o_row + v2[2:3, 0:1]).astype(o_ref.dtype)


def phn_dur_output_proj(x, params, *, tm=1024, min_grid_steps=2):
    """x: (B, T, D).  Returns (B, T) == output_proj(x).squeeze(-1)."""
    B, T, D = x.shape
    D4, D16 = D // 4, D // 16
    w1, vec1, w2, vec2 = params
    N = B * T

    # Row tile: lane-aligned (multiple of 128), big enough to amortize the
    # ~0.35us/step grid overhead, small enough that the "parallel" grid axis
    # has >= min_grid_steps so both v7x TensorCores get work.
    assert tm % 128 == 0, "tm must be a multiple of the 128-lane width"
    per_core = _round_up(pl.cdiv(N, min_grid_steps), 128)
    tm_eff = max(128, min(tm, per_core))
    grid = pl.cdiv(N, tm_eff)
    n_pad_out = grid * tm_eff            # output padding only (4 B/row, trivial)

    # Dominant HBM stream in bf16 (kernel is mem-bound -> ~2x traffic saving).
    xf = x.reshape(N, D).astype(jnp.bfloat16)
    if N < tm_eff:
        # Tiny input: a single block must cover the array, so pad the few
        # missing rows (negligible).  For N >= tm_eff there is NO host-side
        # pad: the ragged final block is handled by Pallas edge masking; any
        # NaN produced from unspecified tail rows lands in output lanes >= N
        # and is sliced off below (nothing reduces across rows).
        xf = jnp.pad(xf, ((0, tm_eff - N), (0, 0)))

    rep = lambda i: (0, 0)   # parameters: same (resident) block every grid step

    # VMEM footprint -> compiler limit (<= 48 MiB so it also fits v7x 64 MiB/TC).
    x_item = xf.dtype.itemsize
    vmem_bytes = (
        2 * tm_eff * D * x_item                               # x double buffer
        + 2 * tm_eff * 4                                      # (1, TM) out bufs
        + 2 * (w1.size * w1.dtype.itemsize + w2.size * w2.dtype.itemsize
               + vec1.size * 4 + vec2.size * 4)               # resident params
        + 2 * tm_eff * (D4 * 4 + D4 * 2 + D16 * 4))           # intermediates
    vmem_limit = int(min(max(int(1.5 * vmem_bytes) + (4 << 20), 16 << 20),
                         48 << 20))

    flops = int(2 * N * (D * D4 + D4 * D16 + D16))
    transcendentals = int(N * (D4 + D16 + 2))                 # sigmoids + rsqrts
    bytes_accessed = int(x_item * N * D + 4 * N
                         + 2 * (D * D4 + D4 * D16) + 4 * 3 * (D4 + D16))

    out = pl.pallas_call(
        phn_dur_kernel,
        out_shape=jax.ShapeDtypeStruct((1, n_pad_out), jnp.float32),
        grid_spec=pltpu.PrefetchScalarGridSpec(
            num_scalar_prefetch=0,
            grid=(grid,),
            in_specs=[
                pl.BlockSpec((tm_eff, D), lambda i: (i, 0)),   # x rows (bf16)
                pl.BlockSpec((D, D4), rep),                    # W1 (bf16, resident)
                pl.BlockSpec((3, D4), rep),                    # [b1; g1; be1]
                pl.BlockSpec((D4, D16), rep),                  # W2 (bf16, resident)
                pl.BlockSpec((3, D16), rep),                   # [b2; w3'; c]
            ],
            out_specs=pl.BlockSpec((1, tm_eff), lambda i: (0, i)),
        ),
        compiler_params=pltpu.CompilerParams(
            dimension_semantics=("parallel",),
            vmem_limit_bytes=vmem_limit),
        cost_estimate=pl.CostEstimate(
            flops=flops,
            transcendentals=transcendentals,
            bytes_accessed=bytes_accessed),
    )(xf, w1, vec1, w2, vec2)

    return out[0, :N].reshape(B, T)   # drop padded lanes; == .squeeze(-1)


def make_raw_params(dim, key):
    """PyTorch-shaped f32 parameters (Linear weights stored as (in, out))."""
    d4, d16 = dim // 4, dim // 16
    ks = jax.random.split(key, 5)

    def lin(k, fan_in, fan_out):
        kw, kb = jax.random.split(k)
        bound = 1.0 / float(fan_in) ** 0.5
        w = jax.random.uniform(kw, (fan_in, fan_out), jnp.float32, -bound, bound)
        b = jax.random.uniform(kb, (fan_out,), jnp.float32, -bound, bound)
        return w, b

    w1, b1 = lin(ks[0], dim, d4)
    w2, b2 = lin(ks[1], d4, d16)
    w3, b3 = lin(ks[2], d16, 1)
    # Non-default LayerNorm affines so the LN2/Linear3 folding is exercised.
    g1 = 1.0 + 0.1 * jax.random.normal(jax.random.fold_in(ks[3], 0), (d4,))
    be1 = 0.1 * jax.random.normal(jax.random.fold_in(ks[3], 1), (d4,))
    g2 = 1.0 + 0.1 * jax.random.normal(jax.random.fold_in(ks[4], 0), (d16,))
    be2 = 0.1 * jax.random.normal(jax.random.fold_in(ks[4], 1), (d16,))
    return dict(w1=w1, b1=b1, g1=g1, be1=be1, w2=w2, b2=b2,
                g2=g2, be2=be2, w3=w3, b3=b3)


def pack_params(raw):
    """Pack for the kernel: bf16 weights, fused per-layer vectors, and LN2
    affine folded into the final linear: w3' = g2*w3, c = be2.w3 + b3."""
    w3_col = raw["w3"][:, 0]                                    # (d16,)
    w3_prime = raw["g2"] * w3_col
    c = jnp.dot(raw["be2"], w3_col) + raw["b3"][0]
    c_row = jnp.zeros_like(raw["b2"]).at[0].set(c)              # scalar in [0]
    vec1 = jnp.stack([raw["b1"], raw["g1"], raw["be1"]], axis=0)   # (3, d4)
    vec2 = jnp.stack([raw["b2"], w3_prime, c_row], axis=0)         # (3, d16)
    return (raw["w1"].astype(jnp.bfloat16), vec1,
            raw["w2"].astype(jnp.bfloat16), vec2)


def phn_dur_forward(x, num_tokens, ref_length, params):
    out = token_dur_model_forward(x, num_tokens, ref_length)  # (B, T, dim)
    return phn_dur_output_proj(out, params)                   # (B, T)


def reference_forward(x, raw, *, quantize_like_kernel=False):
    """Pure-JAX reference of PhnDur.output_proj.  With quantize_like_kernel,
    applies the same bf16 casts the kernel uses (rest in f32)."""
    B, T, D = x.shape
    xf = x.reshape(B * T, D)
    w1, w2 = raw["w1"], raw["w2"]
    if quantize_like_kernel:
        xf = xf.astype(jnp.bfloat16).astype(jnp.float32)
        w1 = w1.astype(jnp.bfloat16).astype(jnp.float32)
        w2 = w2.astype(jnp.bfloat16).astype(jnp.float32)

    def ln(v, g, b):
        m = jnp.mean(v, -1, keepdims=True)
        var = jnp.mean(jnp.square(v - m), -1, keepdims=True)
        return (v - m) / jnp.sqrt(var + LN_EPS) * g + b

    h = _silu(xf @ w1 + raw["b1"])
    h = ln(h, raw["g1"], raw["be1"])
    if quantize_like_kernel:
        h = h.astype(jnp.bfloat16).astype(jnp.float32)
    h = _silu(h @ w2 + raw["b2"])
    h = ln(h, raw["g2"], raw["be2"])
    out = h @ raw["w3"][:, 0] + raw["b3"][0]
    return out.reshape(B, T)


if __name__ == "__main__":
    B, T, DIM = 2, 8, 64   # dim -> dim//4=16 -> dim//16=4 -> 1
    key = jax.random.PRNGKey(0)
    kx, kp = jax.random.split(key)

    x = jax.random.normal(kx, (B, T, DIM), jnp.float32)
    num_tokens = jnp.full((B,), T, jnp.int32)
    ref_length = jnp.full((B,), T, jnp.int32)

    raw = make_raw_params(DIM, kp)
    params = pack_params(raw)

    y = phn_dur_forward(x, num_tokens, ref_length, params)
    jax.block_until_ready(y)
    assert y.shape == (B, T), y.shape

    # 1) Kernel vs a quantization-matched pure-JAX reference (same bf16 casts):
    #    validates the kernel math itself.
    y_q = reference_forward(x, raw, quantize_like_kernel=True)
    err_q = float(jnp.max(jnp.abs(y - y_q)))
    assert jnp.allclose(y, y_q, atol=1e-2, rtol=1e-2), err_q

    # 2) Kernel vs the full-f32 PyTorch-faithful reference: the allowed gap is
    #    the measured bf16 quantization error plus a small slack.
    y_f32 = reference_forward(x, raw, quantize_like_kernel=False)
    qerr = float(jnp.max(jnp.abs(y_q - y_f32)))
    kerr = float(jnp.max(jnp.abs(y - y_f32)))
    assert kerr <= qerr + 2e-2, (kerr, qerr)

    print("KERNEL_OK")
</pallas_src>

<mosaic_0001>
module attributes {stable_mosaic.version = 11 : i64} {
  func.func @phn_dur_kernel(%arg0: i32, %arg1: memref<128x64xbf16, #tpu.memory_space<vmem>>, %arg2: memref<64x16xbf16, #tpu.memory_space<vmem>>, %arg3: memref<3x16xf32, #tpu.memory_space<vmem>>, %arg4: memref<16x4xbf16, #tpu.memory_space<vmem>>, %arg5: memref<3x4xf32, #tpu.memory_space<vmem>>, %arg6: memref<1x128xf32, #tpu.memory_space<vmem>>) attributes {dimension_semantics = [#tpu.dimension_semantics<parallel>], iteration_bounds = array<i64: 1>, scalar_prefetch = 0 : i64, scratch_operands = 0 : i64, tpu.core_type = #tpu.core_type<tc>, window_params = [{transform_indices = @transform_0, window_bounds = array<i64: 128, 64>}, {pipeline_mode = #tpu.pipeline_mode<synchronous>, transform_indices = @transform_1, window_bounds = array<i64: 64, 16>}, {pipeline_mode = #tpu.pipeline_mode<synchronous>, transform_indices = @transform_2, window_bounds = array<i64: 3, 16>}, {pipeline_mode = #tpu.pipeline_mode<synchronous>, transform_indices = @transform_3, window_bounds = array<i64: 16, 4>}, {pipeline_mode = #tpu.pipeline_mode<synchronous>, transform_indices = @transform_4, window_bounds = array<i64: 3, 4>}, {transform_indices = @transform_5, window_bounds = array<i64: 1, 128>}]} {
    %c0 = arith.constant 0 : index
    %c0_0 = arith.constant 0 : index
    %0 = vector.load %arg1[%c0, %c0_0] : memref<128x64xbf16, #tpu.memory_space<vmem>>, vector<128x64xbf16>
    %c0_1 = arith.constant 0 : index
    %c0_2 = arith.constant 0 : index
    %1 = vector.load %arg3[%c0_1, %c0_2] : memref<3x16xf32, #tpu.memory_space<vmem>>, vector<3x16xf32>
    %c0_3 = arith.constant 0 : index
    %c0_4 = arith.constant 0 : index
    %2 = vector.load %arg5[%c0_3, %c0_4] : memref<3x4xf32, #tpu.memory_space<vmem>>, vector<3x4xf32>
    %c0_5 = arith.constant 0 : index
    %c0_6 = arith.constant 0 : index
    %3 = vector.load %arg2[%c0_5, %c0_6] : memref<64x16xbf16, #tpu.memory_space<vmem>>, vector<64x16xbf16>
    %cst = arith.constant dense<0.000000e+00> : vector<128x16xf32>
    %4 = tpu.matmul %0, %3, %cst {dimension_numbers = #tpu.dot_dimension_numbers<[1], [0], [0], [1], [0, 0, 1, 1], [], []>} : vector<128x64xbf16>, vector<64x16xbf16>, vector<128x16xf32> -> vector<128x16xf32>
    %5 = vector.extract_strided_slice %1 {offsets = [0, 0], sizes = [1, 16], strides = [1, 1]} : vector<3x16xf32> to vector<1x16xf32>
    %6 = vector.broadcast %5 : vector<1x16xf32> to vector<128x16xf32>
    %7 = arith.addf %4, %6 : vector<128x16xf32>
    %8 = arith.negf %7 : vector<128x16xf32>
    %9 = math.exp %8 : vector<128x16xf32>
    %cst_7 = arith.constant 1.000000e+00 : f32
    %10 = vector.broadcast %cst_7 : f32 to vector<128x16xf32>
    %11 = arith.addf %10, %9 : vector<128x16xf32>
    %12 = arith.divf %10, %11 : vector<128x16xf32>
    %13 = arith.mulf %7, %12 : vector<128x16xf32>
    %14 = vector.extract_strided_slice %1 {offsets = [1, 0], sizes = [1, 16], strides = [1, 1]} : vector<3x16xf32> to vector<1x16xf32>
    %15 = vector.extract_strided_slice %1 {offsets = [2, 0], sizes = [1, 16], strides = [1, 1]} : vector<3x16xf32> to vector<1x16xf32>
    %cst_8 = arith.constant dense<0.000000e+00> : vector<128xf32>
    %16 = vector.multi_reduction <add>, %13, %cst_8 [1] : vector<128x16xf32> to vector<128xf32>
    %17 = vector.shape_cast %16 : vector<128xf32> to vector<128x1xf32>
    %cst_9 = arith.constant 1.600000e+01 : f32
    %18 = vector.broadcast %cst_9 : f32 to vector<128x1xf32>
    %19 = arith.divf %17, %18 : vector<128x1xf32>
    %20 = arith.mulf %13, %13 : vector<128x16xf32>
    %cst_10 = arith.constant dense<0.000000e+00> : vector<128xf32>
    %21 = vector.multi_reduction <add>, %20, %cst_10 [1] : vector<128x16xf32> to vector<128xf32>
    %22 = vector.shape_cast %21 : vector<128xf32> to vector<128x1xf32>
    %cst_11 = arith.constant 1.600000e+01 : f32
    %23 = vector.broadcast %cst_11 : f32 to vector<128x1xf32>
    %24 = arith.divf %22, %23 : vector<128x1xf32>
    %25 = arith.mulf %19, %19 : vector<128x1xf32>
    %26 = arith.subf %24, %25 : vector<128x1xf32>
    %cst_12 = arith.constant 9.99999974E-6 : f32
    %27 = vector.broadcast %cst_12 : f32 to vector<128x1xf32>
    %28 = arith.addf %26, %27 : vector<128x1xf32>
    %29 = math.rsqrt %28 : vector<128x1xf32>
    %30 = vector.broadcast %19 : vector<128x1xf32> to vector<128x16xf32>
    %31 = arith.subf %13, %30 : vector<128x16xf32>
    %32 = vector.broadcast %29 : vector<128x1xf32> to vector<128x16xf32>
    %33 = arith.mulf %31, %32 : vector<128x16xf32>
    %34 = vector.broadcast %14 : vector<1x16xf32> to vector<128x16xf32>
    %35 = arith.mulf %33, %34 : vector<128x16xf32>
    %36 = vector.broadcast %15 : vector<1x16xf32> to vector<128x16xf32>
    %37 = arith.addf %35, %36 : vector<128x16xf32>
    %38 = arith.truncf %37 : vector<128x16xf32> to vector<128x16xbf16>
    %c0_13 = arith.constant 0 : index
    %c0_14 = arith.constant 0 : index
    %39 = vector.load %arg4[%c0_13, %c0_14] : memref<16x4xbf16, #tpu.memory_space<vmem>>, vector<16x4xbf16>
    %cst_15 = arith.constant dense<0.000000e+00> : vector<128x4xf32>
    %40 = tpu.matmul %38, %39, %cst_15 {dimension_numbers = #tpu.dot_dimension_numbers<[1], [0], [0], [1], [0, 0, 1, 1], [], []>} : vector<128x16xbf16>, vector<16x4xbf16>, vector<128x4xf32> -> vector<128x4xf32>
    %41 = vector.extract_strided_slice %2 {offsets = [0, 0], sizes = [1, 4], strides = [1, 1]} : vector<3x4xf32> to vector<1x4xf32>
    %42 = vector.broadcast %41 : vector<1x4xf32> to vector<128x4xf32>
    %43 = arith.addf %40, %42 : vector<128x4xf32>
    %44 = arith.negf %43 : vector<128x4xf32>
    %45 = math.exp %44 : vector<128x4xf32>
    %cst_16 = arith.constant 1.000000e+00 : f32
    %46 = vector.broadcast %cst_16 : f32 to vector<128x4xf32>
    %47 = arith.addf %46, %45 : vector<128x4xf32>
    %48 = arith.divf %46, %47 : vector<128x4xf32>
    %49 = arith.mulf %43, %48 : vector<128x4xf32>
    %cst_17 = arith.constant dense<0.000000e+00> : vector<128xf32>
    %50 = vector.multi_reduction <add>, %49, %cst_17 [1] : vector<128x4xf32> to vector<128xf32>
    %51 = vector.shape_cast %50 : vector<128xf32> to vector<128x1xf32>
    %cst_18 = arith.constant 4.000000e+00 : f32
    %52 = vector.broadcast %cst_18 : f32 to vector<128x1xf32>
    %53 = arith.divf %51, %52 : vector<128x1xf32>
    %54 = arith.mulf %49, %49 : vector<128x4xf32>
    %cst_19 = arith.constant dense<0.000000e+00> : vector<128xf32>
    %55 = vector.multi_reduction <add>, %54, %cst_19 [1] : vector<128x4xf32> to vector<128xf32>
    %56 = vector.shape_cast %55 : vector<128xf32> to vector<128x1xf32>
    %cst_20 = arith.constant 4.000000e+00 : f32
    %57 = vector.broadcast %cst_20 : f32 to vector<128x1xf32>
    %58 = arith.divf %56, %57 : vector<128x1xf32>
    %59 = arith.mulf %53, %53 : vector<128x1xf32>
    %60 = arith.subf %58, %59 : vector<128x1xf32>
    %cst_21 = arith.constant 9.99999974E-6 : f32
    %61 = vector.broadcast %cst_21 : f32 to vector<128x1xf32>
    %62 = arith.addf %60, %61 : vector<128x1xf32>
    %63 = math.rsqrt %62 : vector<128x1xf32>
    %64 = vector.broadcast %53 : vector<128x1xf32> to vector<128x4xf32>
    %65 = arith.subf %49, %64 : vector<128x4xf32>
    %66 = vector.broadcast %63 : vector<128x1xf32> to vector<128x4xf32>
    %67 = arith.mulf %65, %66 : vector<128x4xf32>
    %68 = vector.extract_strided_slice %2 {offsets = [1, 0], sizes = [1, 4], strides = [1, 1]} : vector<3x4xf32> to vector<1x4xf32>
    %cst_22 = arith.constant dense<0.000000e+00> : vector<1x128xf32>
    %69 = tpu.matmul %68, %67, %cst_22 {dimension_numbers = #tpu.dot_dimension_numbers<[1], [1], [0], [0], [0, 0, 1, 0], [], []>} : vector<1x4xf32>, vector<128x4xf32>, vector<1x128xf32> -> vector<1x128xf32>
    %70 = vector.extract_strided_slice %2 {offsets = [2, 0], sizes = [1, 1], strides = [1, 1]} : vector<3x4xf32> to vector<1x1xf32>
    %71 = vector.broadcast %70 : vector<1x1xf32> to vector<1x128xf32>
    %72 = arith.addf %69, %71 : vector<1x128xf32>
    %c0_23 = arith.constant 0 : index
    %c0_24 = arith.constant 0 : index
    %73 = vector.load %arg6[%c0_23, %c0_24] : memref<1x128xf32, #tpu.memory_space<vmem>>, vector<1x128xf32>
    tpu.vector_store %arg6[%c0_23, %c0_24], %72 {strides = array<i32>} : memref<1x128xf32, #tpu.memory_space<vmem>>, vector<1x128xf32>,
    return
  }
  func.func @transform_0(%arg0: i32) -> (i32, i32) {
    %c0_i32 = arith.constant 0 : i32
    %c0_i32_0 = arith.constant 0 : i32
    return %arg0, %c0_i32 : i32, i32
  }
  func.func @transform_1(%arg0: i32) -> (i32, i32) {
    %c0_i32 = arith.constant 0 : i32
    %c0_i32_0 = arith.constant 0 : i32
    %c0_i32_1 = arith.constant 0 : i32
    return %c0_i32, %c0_i32_0 : i32, i32
  }
  func.func @transform_2(%arg0: i32) -> (i32, i32) {
    %c0_i32 = arith.constant 0 : i32
    %c0_i32_0 = arith.constant 0 : i32
    %c0_i32_1 = arith.constant 0 : i32
    return %c0_i32, %c0_i32_0 : i32, i32
  }
  func.func @transform_3(%arg0: i32) -> (i32, i32) {
    %c0_i32 = arith.constant 0 : i32
    %c0_i32_0 = arith.constant 0 : i32
    %c0_i32_1 = arith.constant 0 : i32
    return %c0_i32, %c0_i32_0 : i32, i32
  }
  func.func @transform_4(%arg0: i32) -> (i32, i32) {
    %c0_i32 = arith.constant 0 : i32
    %c0_i32_0 = arith.constant 0 : i32
    %c0_i32_1 = arith.constant 0 : i32
    return %c0_i32, %c0_i32_0 : i32, i32
  }
  func.func @transform_5(%arg0: i32) -> (i32, i32) {
    %c0_i32 = arith.constant 0 : i32
    %c0_i32_0 = arith.constant 0 : i32
    return %c0_i32, %arg0 : i32, i32
  }
}

</mosaic_0001>

<bundles_post_ra>
// kernel: tpu_custom_call.1
= control target key start
LH: loop header
LB: loop body
LE: loop exit
PB: predicated region body
PF: predicated region fallthrough
CT: control target
= control target key end

     0   :  { %vm116_vm0 = vcmask 523264   ;;  %s2430_s0 = inlined_call_operand.vmem [shape: bf16[128,64], index: 0, kind: input, shape index: {}]   ;;  %s2431_s1 = inlined_call_operand.vmem [shape: bf16[64,16], index: 1, kind: input, shape index: {}]   ;;  %s2432_s2 = inlined_call_operand.vmem [shape: f32[3,16], index: 2, kind: input, shape index: {}]   ;;  %s2433_s3 = inlined_call_operand.vmem [shape: bf16[16,4], index: 3, kind: input, shape index: {}]   ;;  %s2434_s4 = inlined_call_operand.vmem [shape: f32[3,4], index: 4, kind: input, shape index: {}]   ;;  %s2435_s5 = inlined_call_operand.hbm [shape: f32[1,128], index: 5, kind: output, shape index: {}]  }
   0x1   :  { %v1500_v0 = vld [vmem:[%s2431_s1] sm:$0xff]   ;;  %v1501_v1 = vld [vmem:[%s2431_s1 + $0x8] sm:$0xff]   ;;  %v1502_v2 = vld [vmem:[%s2431_s1 + $0x10] sm:$0xff]  }
   0x2   :  { %1385 = vmatprep.subr.bf16.mxu0 %v1500_v0  ;;  %v1504_v3 = vld [vmem:[%s2430_s0] sm:$0xff]   ;;  %v1503_v4 = vld [vmem:[%s2431_s1 + $0x18] sm:$0xff]  }
   0x3   :  { %1386 = vmatpush3.bf16.msra.mxu0 %v1500_v0  ;;  %1393 = vmatprep.mubr.msk.bf16.mxu0 %vm116_vm0, %v1504_v3 }
   0x4   :  { %1387 = vmatprep.subr.bf16.mxu0 %v1501_v1 }
   0x7   :  { %1388 = vmatpush3.bf16.msra.mxu0 %v1501_v1 }
   0x8   :  { %1389 = vmatprep.subr.bf16.mxu0 %v1502_v2 }
   0xb   :  { %1390 = vmatpush3.bf16.msra.mxu0 %v1502_v2 }
   0xc   :  { %1391 = vmatprep.subr.bf16.mxu0 %v1503_v4 }
   0xd   :  { %10 = vsyncpa [#allocation3], 0  ;;  %v1505_v5 = vld [vmem:[%s2430_s0 + $0x8] sm:$0xff]   ;;  %v1506_v6 = vld [vmem:[%s2430_s0 + $0x10] sm:$0xff]   ;;  %v48_v12 = vlaneseq  ;;  %vm350_vm1 = vcmask 130048   ;;  %vm885_vm2 = vcmask 31744  }
   0xe   :  { %v1507_v7 = vld [vmem:[%s2430_s0 + $0x18] sm:$0xff]   ;;  %v1508_v8 = vld [vmem:[%s2430_s0 + $0x20] sm:$0xff]   ;;  %v1509_v9 = vld [vmem:[%s2430_s0 + $0x28] sm:$0xff]   ;;  %vm1730_vm3 = vmmov 0  }
   0xf   :  { %1392 = vmatpush3.bf16.msra.mxu0 %v1503_v4  ;;  %v1510_v10 = vld [vmem:[%s2430_s0 + $0x30] sm:$0xff]   ;;  %v1511_v11 = vld [vmem:[%s2430_s0 + $0x38] sm:$0xff]   ;;  %v1808_v13 = vshrl.u32 %v48_v12, 7  ;;  %v1814_v15 = vld [vmem:[%s2432_s2] sm:$0x7] }
  0x10   :  { %vm2345_vm4 = vmpackc.low %vm885_vm2, %vm885_vm2 }
  0x11   :  { %v50_v14 = vsub.s32 0, %v1808_v13 }
  0x12   :  { %1394 = vmatmul.mubr.msk.bf16.vlgmr.msra.gmra.mrb[0].mxu0 %vm116_vm0, %v1505_v5 }
  0x13   :  { %1397 = vmatprep.mubr.msk.bf16.mxu0 %vm116_vm0, %v1506_v6  ;;  %v1819_v16 = vrot.slane %v1814_v15, %v50_v14 }
  0x1a   :  { %1398 = vmatmul.mubr.msk.bf16.gmra.mrb[4].mxu0 %vm116_vm0, %v1507_v7 }
  0x1b   :  { %1401 = vmatprep.mubr.msk.bf16.mxu0 %vm116_vm0, %v1508_v8 }
  0x22   :  { %1402 = vmatmul.mubr.msk.bf16.gmra.mrb[8].mxu0 %vm116_vm0, %v1509_v9 }
  0x23   :  { %1405 = vmatprep.mubr.msk.bf16.mxu0 %vm116_vm0, %v1510_v10 }
  0x2a   :  { %1406 = vmatmul.mubr.msk.bf16.gmra.mrb[12].mxu0 %vm116_vm0, %v1511_v11 }
  0xe5   :  { %v1395_v17 = vpop.f32.mrb[0].mxu0 }
  0xe6   :  { %v1822_v18 = vadd.f32 %v1395_v17, %v1819_v16  ;;  %v175_v19 = vpop.f32.mrb[1].mxu0 }
  0xe7   :  { %v1825_v20 = vadd.f32 %v175_v19, %v1819_v16  ;;  %v1396_v21 = vpop.f32.mrb[2].mxu0 }
  0xe8   :  { %v1291_v22 = vmul.f32 -1.442695, %v1822_v18  ;;  %v1829_v23 = vadd.f32 %v1396_v21, %v1819_v16  ;;  %v178_v24 = vpop.f32.mrb[3].mxu0 }
  0xe9   :  { %v1289_v25 = vmul.f32 -1.442695, %v1825_v20  ;;  %v1833_v26 = vadd.f32 %v178_v24, %v1819_v16 }
  0xea   :  { %1513 = vpow2.f32 %v1291_v22  ;;  %v1292_v27 = vmul.f32 -1.442695, %v1829_v23 }
  0xeb   :  { %1515 = vpow2.f32 %v1289_v25  ;;  %v1290_v28 = vmul.f32 -1.442695, %v1833_v26 }
  0xec   :  { %1517 = vpow2.f32 %v1292_v27 }
  0xed   :  { %1519 = vpow2.f32 %v1290_v28  ;;  %v1399_v29 = vpop.f32.mrb[4].mxu0 }
  0xee   :  { %v1838_v30 = vadd.f32 %v1399_v29, %v1819_v16  ;;  %v191_v31 = vpop.f32.mrb[5].mxu0 }
  0xef   :  { %v1841_v32 = vadd.f32 %v191_v31, %v1819_v16  ;;  %v1400_v33 = vpop.f32.mrb[6].mxu0 }
  0xf0   :  { %v1295_v34 = vmul.f32 -1.442695, %v1838_v30  ;;  %v1845_v35 = vadd.f32 %v1400_v33, %v1819_v16  ;;  %v194_v36 = vpop.f32.mrb[7].mxu0 }
  0xf1   :  { %v1293_v37 = vmul.f32 -1.442695, %v1841_v32  ;;  %v1849_v38 = vadd.f32 %v194_v36, %v1819_v16 }
  0xf2   :  { %v1296_v39 = vmul.f32 -1.442695, %v1845_v35  ;;  %1521 = vpow2.f32 %v1295_v34 }
  0xf3   :  { %v1294_v40 = vmul.f32 -1.442695, %v1849_v38 }
  0xf4   :  { %v1514_v41 = vpop.eup %1513  ;;  %1523 = vpow2.f32 %v1296_v39 }
  0xf5   :  { %v1516_v42 = vpop.eup %1515  ;;  %v288_v43 = vadd.f32 1.0, %v1514_v41  ;;  %1525 = vpow2.f32 %v1293_v37  ;;  %v1403_v44 = vpop.f32.mrb[8].mxu0 }
  0xf6   :  { %v1518_v45 = vpop.eup %1517  ;;  %v286_v46 = vadd.f32 1.0, %v1516_v42  ;;  %1527 = vpow2.f32 %v1294_v40  ;;  %v207_v47 = vpop.f32.mrb[9].mxu0  ;;  %v1854_v53 = vadd.f32 %v1403_v44, %v1819_v16 }
  0xf7   :  { %v1520_v48 = vpop.eup %1519  ;;  %1529 = vrcp.f32 %v288_v43  ;;  %v289_v49 = vadd.f32 1.0, %v1518_v45  ;;  %v1404_v50 = vpop.f32.mrb[10].mxu0  ;;  %v1861_v57 = vadd.f32 %v207_v47, %v1819_v16 }
  0xf8   :  { %1531 = vrcp.f32 %v286_v46  ;;  %v287_v51 = vadd.f32 1.0, %v1520_v48  ;;  %v210_v52 = vpop.f32.mrb[11].mxu0  ;;  %v1857_v54 = vadd.f32 %v1404_v50, %v1819_v16  ;;  %v1299_v56 = vmul.f32 -1.442695, %v1854_v53 }
  0xf9   :  { %1533 = vrcp.f32 %v289_v49  ;;  %v1865_v61 = vadd.f32 %v210_v52, %v1819_v16  ;;  %v1297_v6 = vmul.f32 -1.442695, %v1861_v57 }
  0xfa   :  { %1535 = vrcp.f32 %v287_v51  ;;  %v1300_v60 = vmul.f32 -1.442695, %v1857_v54 }
  0xfb   :  { %1537 = vpow2.f32 %v1299_v56  ;;  %v1298_v9 = vmul.f32 -1.442695, %v1865_v61 }
  0xfc   :  { %v1522_v55 = vpop.eup %1521  ;;  %1539 = vpow2.f32 %v1300_v60 }
  0xfd   :  { %v1407_v58 = vpop.f32.mrb[12].mxu0  ;;  %v292_v3 = vadd.f32 1.0, %v1522_v55 }
  0xfe   :  { %v1524_v59 = vpop.eup %1523  ;;  %v223_v62 = vpop.f32.mrb[13].mxu0  ;;  %v1890_v25 = vadd.f32 %v1407_v58, %v1819_v16 }
  0xff   :  { %v1526_v63 = vpop.eup %1525  ;;  %v293_v0 = vadd.f32 1.0, %v1524_v59  ;;  %v1408_v1 = vpop.f32.mrb[14].mxu0  ;;  %v1904_v39 = vadd.f32 %v223_v62, %v1819_v16 }
 0x100   :  { %v1528_v2 = vpop.eup %1527  ;;  %v226_v4 = vpop.f32.mrb[15].mxu0  ;;  %v290_v21 = vadd.f32 1.0, %v1526_v63  ;;  %v1897_v28 = vadd.f32 %v1408_v1, %v1819_v16  ;;  %v1303_v37 = vmul.f32 -1.442695, %v1890_v25 }
 0x101   :  { %v1530_v5 = vpop.eup %1529  ;;  %1541 = vrcp.f32 %v293_v0  ;;  %v291_v12 = vadd.f32 1.0, %v1528_v2  ;;  %v1911_v44 = vadd.f32 %v226_v4, %v1819_v16  ;;  %v1301_v55 = vmul.f32 -1.442695, %v1904_v39 }
 0x102   :  { %v1532_v7 = vpop.eup %1531  ;;  %v1869_v8 = vmul.f32 %v1530_v5, %v1822_v18  ;;  %1543 = vrcp.f32 %v292_v3  ;;  %v1304_v43 = vmul.f32 -1.442695, %v1897_v28 }
 0x103   :  { %v1534_v10 = vpop.eup %1533  ;;  %v1873_v11 = vmul.f32 %v1532_v7, %v1825_v20  ;;  %1545 = vpow2.f32 %v1297_v6  ;;  %v1302_v58 = vmul.f32 -1.442695, %v1911_v44 }
 0x104   :  { %v1536_v17 = vpop.eup %1535  ;;  %v1876_v19 = vmul.f32 %v1534_v10, %v1829_v23  ;;  %v357_v22 = vsel %vm350_vm1, %v1869_v8, 0.0  ;;  %1547 = vpow2.f32 %v1298_v9  ;;  %v418_v41 = vmul.f32 %v1869_v8, %v1869_v8 }
 0x105   :  { %v1881_v18 = vmul.f32 %v1536_v17, %v1833_v26  ;;  %358 = vadd.xlane.f32.xlu1 %v357_v22  ;;  %v351_v20 = vsel %vm350_vm1, %v1873_v11, 0.0  ;;  %1549 = vrcp.f32 %v291_v12  ;;  %v416_v27 = vmul.f32 %v1873_v11, %v1873_v11  ;;  %v1538_v29 = vpop.eup %1537 }
 0x106   :  { %352 = vadd.xlane.f32.xlu0 %v351_v20  ;;  %1551 = vrcp.f32 %v290_v21  ;;  %v360_v23 = vsel %vm350_vm1, %v1876_v19, 0.0  ;;  %v1540_v31 = vpop.eup %1539  ;;  %v419_v34 = vmul.f32 %v1876_v19, %v1876_v19  ;;  %v296_v49 = vadd.f32 1.0, %v1538_v29 }
 0x107   :  { %v417_v24 = vmul.f32 %v1881_v18, %v1881_v18  ;;  %v354_v26 = vsel %vm350_vm1, %v1881_v18, 0.0  ;;  %v432_v40 = vsel %vm350_vm1, %v416_v27, 0.0  ;;  %v297_v46 = vadd.f32 1.0, %v1540_v31 }
 0x108   :  { %v441_v50 = vsel %vm350_vm1, %v419_v34, 0.0  ;;  %1553 = vpow2.f32 %v1303_v37  ;;  %v438_v16 = vsel %vm350_vm1, %v418_v41, 0.0 }
 0x109   :  { %361 = vadd.xlane.f32.xlu1 %v360_v23  ;;  %v435_v33 = vsel %vm350_vm1, %v417_v24, 0.0  ;;  %1555 = vpow2.f32 %v1304_v43 }
 0x10a   :  { %355 = vadd.xlane.f32.xlu0 %v354_v26  ;;  %1557 = vrcp.f32 %v297_v46 }
 0x10b   :  { %v1542_v36 = vpop.eup %1541  ;;  %1559 = vrcp.f32 %v296_v49 }
 0x10c   :  { %v1544_v42 = vpop.eup %1543  ;;  %v1914_v48 = vmul.f32 %v1542_v36, %v1845_v35  ;;  %1561 = vpow2.f32 %v1301_v55 }
 0x10d   :  { %436 = vadd.xlane.f32.xlu1 %v435_v33  ;;  %v1546_v45 = vpop.eup %1545  ;;  %v1918_v52 = vmul.f32 %v1544_v42, %v1838_v30  ;;  %1563 = vpow2.f32 %v1302_v58 }
 0x10e   :  { %433 = vadd.xlane.f32.xlu0 %v432_v40  ;;  %v1548_v47 = vpop.eup %1547  ;;  %v294_v60 = vadd.f32 1.0, %v1546_v45  ;;  %v372_v30 = vsel %vm350_vm1, %v1914_v48, 0.0  ;;  %v423_v5 = vmul.f32 %v1914_v48, %v1914_v48 }
 0x10f   :  { %v1550_v51 = vpop.eup %1549  ;;  %v295_v35 = vadd.f32 1.0, %v1548_v47  ;;  %v369_v63 = vsel %vm350_vm1, %v1918_v52, 0.0  ;;  %v422_v9 = vmul.f32 %v1918_v52, %v1918_v52 }
 0x110   :  { %v1552_v56 = vpop.eup %1551  ;;  %v1924_v59 = vmul.f32 %v1550_v51, %v1849_v38  ;;  %v453_v23 = vsel %vm350_vm1, %v423_v5, 0.0 }
 0x111   :  { %442 = vadd.xlane.f32.xlu1 %v441_v50  ;;  %v1929_v62 = vmul.f32 %v1552_v56, %v1841_v32  ;;  %1565 = vrcp.f32 %v295_v35  ;;  %v450_v27 = vsel %vm350_vm1, %v422_v9, 0.0 }
 0x112   :  { %439 = vadd.xlane.f32.xlu0 %v438_v16  ;;  %1567 = vrcp.f32 %v294_v60  ;;  %v366_v38 = vsel %vm350_vm1, %v1924_v59, 0.0  ;;  %v421_v0 = vmul.f32 %v1924_v59, %v1924_v59  ;;  %v1554_v2 = vpop.eup %1553 }
 0x113   :  { %v363_v32 = vsel %vm350_vm1, %v1929_v62, 0.0  ;;  %v420_v1 = vmul.f32 %v1929_v62, %v1929_v62  ;;  %v1556_v3 = vpop.eup %1555  ;;  %v300_v20 = vadd.f32 1.0, %v1554_v2 }
 0x114   :  { %v447_v4 = vsel %vm350_vm1, %v421_v0, 0.0  ;;  %v1558_v6 = vpop.eup %1557  ;;  %v301_v17 = vadd.f32 1.0, %v1556_v3 }
 0x115   :  { %373 = vadd.xlane.f32.xlu1 %v372_v30  ;;  %v444_v7 = vsel %vm350_vm1, %v420_v1, 0.0  ;;  %v1560_v10 = vpop.eup %1559  ;;  %v1948_v22 = vmul.f32 %v1558_v6, %v1857_v54 }
 0x116   :  { %370 = vadd.xlane.f32.xlu0 %v369_v63  ;;  %v1562_v12 = vpop.eup %1561  ;;  %v1952_v26 = vmul.f32 %v1560_v10, %v1854_v53  ;;  %1569 = vrcp.f32 %v301_v17 }
 0x117   :  { %v1564_v21 = vpop.eup %1563  ;;  %1571 = vrcp.f32 %v300_v20  ;;  %v298_v54 = vadd.f32 1.0, %v1562_v12  ;;  %v384_v34 = vsel %vm350_vm1, %v1948_v22, 0.0  ;;  %v427_v42 = vmul.f32 %v1948_v22, %v1948_v22 }
 0x118   :  { %v299_v31 = vadd.f32 1.0, %v1564_v21  ;;  %v381_v53 = vsel %vm350_vm1, %v1952_v26, 0.0  ;;  %v426_v46 = vmul.f32 %v1952_v26, %v1952_v26 }
 0x119   :  { %367 = vadd.xlane.f32.xlu1 %v366_v38  ;;  %v465_v50 = vsel %vm350_vm1, %v427_v42, 0.0 }
 0x11a   :  { %364 = vadd.xlane.f32.xlu0 %v363_v32  ;;  %1573 = vrcp.f32 %v299_v31  ;;  %v462_v16 = vsel %vm350_vm1, %v426_v46, 0.0 }
 0x11b   :  { %v1566_v24 = vpop.eup %1565  ;;  %1575 = vrcp.f32 %v298_v54 }
 0x11c   :  { %v1568_v29 = vpop.eup %1567  ;;  %v1956_v33 = vmul.f32 %v1566_v24, %v1865_v61 }
 0x11d   :  { %448 = vadd.xlane.f32.xlu1 %v447_v4  ;;  %v1961_v36 = vmul.f32 %v1568_v29, %v1861_v57 }
 0x11e   :  { %445 = vadd.xlane.f32.xlu0 %v444_v7  ;;  %v378_v37 = vsel %vm350_vm1, %v1956_v33, 0.0  ;;  %v425_v61 = vmul.f32 %v1956_v33, %v1956_v33 }
 0x11f   :  { %v375_v40 = vsel %vm350_vm1, %v1961_v36, 0.0  ;;  %v424_v57 = vmul.f32 %v1961_v36, %v1961_v36 }
 0x120   :  { %v459_v41 = vsel %vm350_vm1, %v425_v61, 0.0  ;;  %v1570_v43 = vpop.eup %1569 }
 0x121   :  { %454 = vadd.xlane.f32.xlu1 %v453_v23  ;;  %v456_v45 = vsel %vm350_vm1, %v424_v57, 0.0  ;;  %v1572_v47 = vpop.eup %1571  ;;  %v1980_v49 = vmul.f32 %v1570_v43, %v1897_v28 }
 0x122   :  { %451 = vadd.xlane.f32.xlu0 %v450_v27  ;;  %v1984_v55 = vmul.f32 %v1572_v47, %v1890_v25  ;;  %v1512_v25 = vld [vmem:[%s2433_s3] sm:$0xff]  }
 0x123   :  { %v396_v35 = vsel %vm350_vm1, %v1980_v49, 0.0  ;;  %1409 = vmatprep.subr.bf16.mxu1 %v1512_v25  ;;  %v431_v0 = vmul.f32 %v1980_v49, %v1980_v49 }
 0x124   :  { %v1574_v51 = vpop.eup %1573  ;;  %v393_v60 = vsel %vm350_vm1, %v1984_v55, 0.0  ;;  %1410 = vmatpush3.bf16.msra.mxu1 %v1512_v25  ;;  %v430_v1 = vmul.f32 %v1984_v55, %v1984_v55 }
 0x125   :  { %385 = vadd.xlane.f32.xlu1 %v384_v34  ;;  %v1576_v56 = vpop.eup %1575  ;;  %v1988_v58 = vmul.f32 %v1574_v51, %v1911_v44  ;;  %v477_v2 = vsel %vm350_vm1, %v431_v0, 0.0 }
 0x126   :  { %382 = vadd.xlane.f32.xlu0 %v381_v53  ;;  %v1993_v28 = vmul.f32 %v1576_v56, %v1904_v39  ;;  %v474_v3 = vsel %vm350_vm1, %v430_v1, 0.0 }
 0x127   :  { %v390_v44 = vsel %vm350_vm1, %v1988_v58, 0.0  ;;  %v429_v30 = vmul.f32 %v1988_v58, %v1988_v58 }
 0x128   :  { %v387_v39 = vsel %vm350_vm1, %v1993_v28, 0.0  ;;  %v428_v63 = vmul.f32 %v1993_v28, %v1993_v28 }
 0x129   :  { %379 = vadd.xlane.f32.xlu1 %v378_v37  ;;  %v471_v38 = vsel %vm350_vm1, %v429_v30, 0.0 }
 0x12a   :  { %376 = vadd.xlane.f32.xlu0 %v375_v40  ;;  %v468_v32 = vsel %vm350_vm1, %v428_v63, 0.0 }
 0x12d   :  { %460 = vadd.xlane.f32.xlu1 %v459_v41 }
 0x12e   :  { %457 = vadd.xlane.f32.xlu0 %v456_v45 }
 0x131   :  { %466 = vadd.xlane.f32.xlu1 %v465_v50 }
 0x132   :  { %463 = vadd.xlane.f32.xlu0 %v462_v16  ;;  %v594_v16 = vsub.s32 1, %v1808_v13 }
 0x134   :  { %v2031_v30 = vrot.slane %v1814_v15, %v594_v16 }
 0x135   :  { %397 = vadd.xlane.f32.xlu1 %v396_v35 }
 0x136   :  { %394 = vadd.xlane.f32.xlu0 %v393_v60 }
 0x139   :  { %391 = vadd.xlane.f32.xlu1 %v390_v44  ;;  %v614_v44 = vsub.s32 2, %v1808_v13 }
 0x13a   :  { %388 = vadd.xlane.f32.xlu0 %v387_v39 }
 0x13d   :  { %472 = vadd.xlane.f32.xlu1 %v471_v38 }
 0x13e   :  { %469 = vadd.xlane.f32.xlu0 %v468_v32 }
 0x141   :  { %478 = vadd.xlane.f32.xlu1 %v477_v2 }
 0x142   :  { %475 = vadd.xlane.f32.xlu0 %v474_v3 }
 0x192   :  { %v359_v4 = vpop.xlane.xlu1 %358 }
 0x193   :  { %v353_v5 = vpop.xlane.xlu0 %352  ;;  %v2018_v24 = vmul.f32 0.0625, %v359_v4 }
 0x194   :  { %v400_v9 = vmul.f32 0.0625, %v353_v5 }
 0x195   :  { %v498_v57 = vmul.f32 %v2018_v24, %v2018_v24 }
 0x196   :  { %v362_v6 = vpop.xlane.xlu1 %361  ;;  %v496_v27 = vmul.f32 %v400_v9, %v400_v9  ;;  %v560_v32 = vsub.f32 %v1873_v11, %v400_v9 }
 0x197   :  { %v356_v7 = vpop.xlane.xlu0 %355  ;;  %v2016_v21 = vmul.f32 0.0625, %v362_v6 }
 0x198   :  { %v401_v10 = vmul.f32 0.0625, %v356_v7 }
 0x199   :  { %v499_v53 = vmul.f32 %v2016_v21, %v2016_v21 }
 0x19a   :  { %v497_v12 = vmul.f32 %v401_v10, %v401_v10  ;;  %v437_v17 = vpop.xlane.xlu1 %436  ;;  %v561_v39 = vsub.f32 %v1881_v18, %v401_v10  ;;  %v2044_v18 = vrot.slane %v1814_v15, %v614_v44  ;;  %v562_v10 = vsub.f32 %v1869_v8, %v2018_v24 }
 0x19b   :  { %v481_v20 = vmul.f32 0.0625, %v437_v17  ;;  %v434_v23 = vpop.xlane.xlu0 %433  ;;  %v563_v17 = vsub.f32 %v1876_v19, %v2016_v21 }
 0x19c   :  { %v480_v29 = vmul.f32 0.0625, %v434_v23 }
 0x19d   :  { %v513_v31 = vsub.f32 %v481_v20, %v497_v12 }
 0x19e   :  { %v512_v54 = vsub.f32 %v480_v29, %v496_v27  ;;  %v443_v34 = vpop.xlane.xlu1 %442 }
 0x19f   :  { %v529_v37 = vadd.f32 1e-05, %v513_v31  ;;  %v483_v61 = vmul.f32 0.0625, %v443_v34  ;;  %v440_v40 = vpop.xlane.xlu0 %439 }
 0x1a0   :  { %v528_v41 = vadd.f32 1e-05, %v512_v54  ;;  %v482_v42 = vmul.f32 0.0625, %v440_v40 }
 0x1a1   :  { %1577 = vrsqrt.f32 %v529_v37  ;;  %v515_v43 = vsub.f32 %v483_v61, %v499_v53 }
 0x1a2   :  { %1579 = vrsqrt.f32 %v528_v41  ;;  %v514_v45 = vsub.f32 %v482_v42, %v498_v57  ;;  %v374_v46 = vpop.xlane.xlu1 %373 }
 0x1a3   :  { %v531_v47 = vadd.f32 1e-05, %v515_v43  ;;  %v371_v50 = vpop.xlane.xlu0 %370  ;;  %v2034_v63 = vmul.f32 0.0625, %v374_v46 }
 0x1a4   :  { %v530_v51 = vadd.f32 1e-05, %v514_v45  ;;  %v2037_v1 = vmul.f32 0.0625, %v371_v50 }
 0x1a5   :  { %1581 = vrsqrt.f32 %v531_v47  ;;  %v503_v20 = vmul.f32 %v2034_v63, %v2034_v63 }
 0x1a6   :  { %1583 = vrsqrt.f32 %v530_v51  ;;  %v368_v56 = vpop.xlane.xlu1 %367  ;;  %v502_v15 = vmul.f32 %v2037_v1, %v2037_v1 }
 0x1a7   :  { %v2025_v35 = vmul.f32 0.0625, %v368_v56  ;;  %v365_v60 = vpop.xlane.xlu0 %364 }
 0x1a8   :  { %v2027_v25 = vmul.f32 0.0625, %v365_v60 }
 0x1a9   :  { %v501_v2 = vmul.f32 %v2025_v35, %v2025_v35 }
 0x1aa   :  { %v449_v38 = vpop.xlane.xlu1 %448  ;;  %v500_v6 = vmul.f32 %v2027_v25, %v2027_v25 }
 0x1ab   :  { %v1578_v0 = vpop.eup %1577  ;;  %v485_v3 = vmul.f32 0.0625, %v449_v38  ;;  %v446_v4 = vpop.xlane.xlu0 %445 }
 0x1ac   :  { %v1580_v5 = vpop.eup %1579  ;;  %v484_v7 = vmul.f32 0.0625, %v446_v4  ;;  %v577_v12 = vmul.f32 %v1578_v0, %v561_v39 }
 0x1ad   :  { %v517_v11 = vsub.f32 %v485_v3, %v501_v2  ;;  %v576_v9 = vmul.f32 %v1580_v5, %v560_v32  ;;  %v565_v2 = vsub.f32 %v1924_v59, %v2025_v35  ;;  %v567_v35 = vsub.f32 %v1914_v48, %v2034_v63 }
 0x1ae   :  { %v516_v23 = vsub.f32 %v484_v7, %v500_v6  ;;  %v455_v27 = vpop.xlane.xlu1 %454  ;;  %v597_v29 = vmul.f32 %v2031_v30, %v577_v12  ;;  %v564_v6 = vsub.f32 %v1929_v62, %v2027_v25  ;;  %v566_v62 = vsub.f32 %v1918_v52, %v2037_v1 }
 0x1af   :  { %v1582_v31 = vpop.eup %1581  ;;  %v533_v54 = vadd.f32 1e-05, %v517_v11  ;;  %v487_v34 = vmul.f32 0.0625, %v455_v27  ;;  %v452_v53 = vpop.xlane.xlu0 %451  ;;  %v596_v8 = vmul.f32 %v2031_v30, %v576_v9 }
 0x1b0   :  { %v1584_v24 = vpop.eup %1583  ;;  %v532_v37 = vadd.f32 1e-05, %v516_v23  ;;  %v486_v61 = vmul.f32 0.0625, %v452_v53  ;;  %v617_v19 = vadd.f32 %v2044_v18, %v597_v29  ;;  %v579_v21 = vmul.f32 %v1582_v31, %v563_v17 }
 0x1b1   :  { %1585 = vrsqrt.f32 %v533_v54  ;;  %v519_v40 = vsub.f32 %v487_v34, %v503_v20  ;;  %v616_v57 = vadd.f32 %v2044_v18, %v596_v8  ;;  %v578_v41 = vmul.f32 %v1584_v24, %v562_v10 }
 0x1b2   :  { %1587 = vrsqrt.f32 %v532_v37  ;;  %v518_v42 = vsub.f32 %v486_v61, %v502_v15  ;;  %v386_v43 = vpop.xlane.xlu1 %385  ;;  %v599_v45 = vmul.f32 %v2031_v30, %v579_v21 }
 0x1b3   :  { %v535_v46 = vadd.f32 1e-05, %v519_v40  ;;  %v383_v47 = vpop.xlane.xlu0 %382  ;;  %v632_v50 = vpack.c.bf16 %v617_v19, %v616_v57  ;;  %v598_v51 = vmul.f32 %v2031_v30, %v578_v41  ;;  %v2070_v3 = vmul.f32 0.0625, %v386_v43 }
 0x1b4   :  { %v534_v16 = vadd.f32 1e-05, %v518_v42  ;;  %v619_v56 = vadd.f32 %v2044_v18, %v599_v45  ;;  %v2074_v7 = vmul.f32 0.0625, %v383_v47 }
 0x1b5   :  { %1589 = vrsqrt.f32 %v535_v46  ;;  %1411 = vmatprep.mubr.msk.bf16.mxu1 %vm350_vm1, %v632_v50  ;;  %v618_v60 = vadd.f32 %v2044_v18, %v598_v51  ;;  %v507_v25 = vmul.f32 %v2070_v3, %v2070_v3 }
 0x1b6   :  { %1591 = vrsqrt.f32 %v534_v16  ;;  %v380_v44 = vpop.xlane.xlu1 %379  ;;  %v506_v34 = vmul.f32 %v2074_v7, %v2074_v7 }
 0x1b7   :  { %v2063_v39 = vmul.f32 0.0625, %v380_v44  ;;  %v377_v38 = vpop.xlane.xlu0 %376  ;;  %v633_v0 = vpack.c.bf16 %v619_v56, %v618_v60 }
 0x1b8   :  { %v2065_v32 = vmul.f32 0.0625, %v377_v38 }
 0x1b9   :  { %1412 = vmatmul.mubr.msk.bf16.vlgmr.msra.gmra.mrb[0].mxu1 %vm350_vm1, %v633_v0  ;;  %v505_v12 = vmul.f32 %v2063_v39, %v2063_v39 }
 0x1ba   :  { %v461_v4 = vpop.xlane.xlu1 %460  ;;  %v504_v17 = vmul.f32 %v2065_v32, %v2065_v32 }
 0x1bb   :  { %v1586_v5 = vpop.eup %1585  ;;  %v489_v10 = vmul.f32 0.0625, %v461_v4  ;;  %v458_v11 = vpop.xlane.xlu0 %457 }
 0x1bc   :  { %v1588_v9 = vpop.eup %1587  ;;  %v488_v20 = vmul.f32 0.0625, %v458_v11  ;;  %v581_v59 = vmul.f32 %v1586_v5, %v565_v2  ;;  %v569_v2 = vsub.f32 %v1956_v33, %v2063_v39  ;;  %v570_v39 = vsub.f32 %v1952_v26, %v2074_v7 }
 0x1bd   :  { %v521_v23 = vsub.f32 %v489_v10, %v505_v12  ;;  %v580_v27 = vmul.f32 %v1588_v9, %v564_v6  ;;  %v568_v12 = vsub.f32 %v1961_v36, %v2065_v32 }
 0x1be   :  { %v520_v29 = vsub.f32 %v488_v20, %v504_v17  ;;  %v467_v31 = vpop.xlane.xlu1 %466  ;;  %v601_v15 = vmul.f32 %v2031_v30, %v581_v59 }
 0x1bf   :  { %v1590_v54 = vpop.eup %1589  ;;  %v537_v53 = vadd.f32 1e-05, %v521_v23  ;;  %v491_v8 = vmul.f32 0.0625, %v467_v31  ;;  %v464_v24 = vpop.xlane.xlu0 %463  ;;  %v600_v48 = vmul.f32 %v2031_v30, %v580_v27  ;;  %v571_v27 = vsub.f32 %v1948_v22, %v2070_v3 }
 0x1c0   :  { %v1592_v63 = vpop.eup %1591  ;;  %v536_v37 = vadd.f32 1e-05, %v520_v29  ;;  %v490_v61 = vmul.f32 0.0625, %v464_v24  ;;  %v621_v52 = vadd.f32 %v2044_v18, %v601_v15  ;;  %v583_v1 = vmul.f32 %v1590_v54, %v567_v35 }
 0x1c1   :  { %1593 = vrsqrt.f32 %v537_v53  ;;  %v523_v19 = vsub.f32 %v491_v8, %v507_v25  ;;  %v620_v21 = vadd.f32 %v2044_v18, %v600_v48  ;;  %v582_v40 = vmul.f32 %v1592_v63, %v566_v62 }
 0x1c2   :  { %1595 = vrsqrt.f32 %v536_v37  ;;  %v522_v57 = vsub.f32 %v490_v61, %v506_v34  ;;  %v398_v41 = vpop.xlane.xlu1 %397  ;;  %v603_v42 = vmul.f32 %v2031_v30, %v583_v1 }
 0x1c3   :  { %v539_v43 = vadd.f32 1e-05, %v523_v19  ;;  %v395_v45 = vpop.xlane.xlu0 %394  ;;  %v634_v46 = vpack.c.bf16 %v621_v52, %v620_v21  ;;  %v602_v47 = vmul.f32 %v2031_v30, %v582_v40  ;;  %v2100_v4 = vmul.f32 0.0625, %v398_v41 }
 0x1c4   :  { %v538_v50 = vadd.f32 1e-05, %v522_v57  ;;  %v623_v51 = vadd.f32 %v2044_v18, %v603_v42  ;;  %v414_v10 = vmul.f32 0.0625, %v395_v45 }
 0x1c5   :  { %1597 = vrsqrt.f32 %v539_v43  ;;  %1415 = vmatprep.mubr.msk.bf16.mxu1 %vm350_vm1, %v634_v46  ;;  %v622_v16 = vadd.f32 %v2044_v18, %v602_v47  ;;  %v511_v25 = vmul.f32 %v2100_v4, %v2100_v4 }
 0x1c6   :  { %1599 = vrsqrt.f32 %v538_v50  ;;  %v392_v56 = vpop.xlane.xlu1 %391  ;;  %v510_v15 = vmul.f32 %v414_v10, %v414_v10 }
 0x1c7   :  { %v413_v60 = vmul.f32 0.0625, %v392_v56  ;;  %v389_v44 = vpop.xlane.xlu0 %388  ;;  %v635_v38 = vpack.c.bf16 %v623_v51, %v622_v16  ;;  %v575_v16 = vsub.f32 %v1980_v49, %v2100_v4 }
 0x1c8   :  { %v412_v0 = vmul.f32 0.0625, %v389_v44 }
 0x1c9   :  { %1416 = vmatmul.mubr.msk.bf16.gmra.mrb[4].mxu1 %vm350_vm1, %v635_v38  ;;  %v509_v11 = vmul.f32 %v413_v60, %v413_v60  ;;  %v573_v43 = vsub.f32 %v1988_v58, %v413_v60  ;;  %v574_v38 = vsub.f32 %v1984_v55, %v414_v10  ;;  %v2138_v10 = vld [vmem:[%s2434_s4] sm:$0x7]  ;;  %s1733_s4 = smov [#allocation2]  }
 0x1ca   :  { %v473_v5 = vpop.xlane.xlu1 %472  ;;  %v508_v59 = vmul.f32 %v412_v0, %v412_v0  ;;  %v572_v46 = vsub.f32 %v1993_v28, %v412_v0  ;;  %s1261_s19 = sshll.u32 %s1733_s4, 4  ;;  %s1262_s19 = int_to_ptr.vmem [resolvable:$true] %s1261_s19 }
 0x1cb   :  { %v1594_v6 = vpop.eup %1593  ;;  %v493_v9 = vmul.f32 0.0625, %v473_v5  ;;  %v470_v17 = vpop.xlane.xlu0 %469  ;;  %s1705_s20 = scalar_lea.vmem %s1262_s19, 16  ;;  %s1709_s21 = scalar_lea.vmem %s1262_s19, 32 }
 0x1cc   :  { %v1596_v20 = vpop.eup %1595  ;;  %v492_v35 = vmul.f32 0.0625, %v470_v17  ;;  %v585_v23 = vmul.f32 %v1594_v6, %v569_v2  ;;  %p1706_p0 = scmp.ne.s32.totalorder %s1262_s19, %s1705_s20  ;;  %p1710_p1 = scmp.lt.s32.totalorder %s1262_s19, %s1262_s19 }
 0x1cd   :  { %v525_v62 = vsub.f32 %v493_v9, %v509_v11  ;;  %v584_v33 = vmul.f32 %v1596_v20, %v568_v12  ;;  %v2143_v9 = vrot.slane %v2138_v10, %v50_v14  ;;  %p1711_p2 = scmp.lt.s32.totalorder %s1709_s21, %s1705_s20 }
 0x1ce   :  { %v524_v36 = vsub.f32 %v492_v35, %v508_v59  ;;  %v479_v32 = vpop.xlane.xlu1 %478  ;;  %v605_v29 = vmul.f32 %v2031_v30, %v585_v23 }
 0x1cf   :  { %v1598_v31 = vpop.eup %1597  ;;  %v541_v54 = vadd.f32 1e-05, %v525_v62  ;;  %v495_v34 = vmul.f32 0.0625, %v479_v32  ;;  %v476_v53 = vpop.xlane.xlu0 %475  ;;  %v604_v8 = vmul.f32 %v2031_v30, %v584_v33  ;;  %p1712_p3 = por %p1711_p2, %p1710_p1 }
 0x1d0   :  { %v1600_v22 = vpop.eup %1599  ;;  %v540_v3 = vadd.f32 1e-05, %v524_v36  ;;  %v494_v24 = vmul.f32 0.0625, %v476_v53  ;;  %v625_v48 = vadd.f32 %v2044_v18, %v605_v29  ;;  %v587_v26 = vmul.f32 %v1598_v31, %v571_v27 }
 0x1d1   :  { %1601 = vrsqrt.f32 %v541_v54  ;;  %v527_v7 = vsub.f32 %v495_v34, %v511_v25  ;;  %v624_v63 = vadd.f32 %v2044_v18, %v604_v8  ;;  %v586_v37 = vmul.f32 %v1600_v22, %v570_v39  ;;  %p1713_p4 = pnand %p1712_p3, %p1706_p0 }
 0x1d2   :  { %1603 = vrsqrt.f32 %v540_v3  ;;  %v526_v61 = vsub.f32 %v494_v24, %v510_v15  ;;  %v607_v52 = vmul.f32 %v2031_v30, %v587_v26 }
 0x1d3   :  { %v543_v1 = vadd.f32 1e-05, %v527_v7  ;;  %v636_v19 = vpack.c.bf16 %v625_v48, %v624_v63  ;;  %v606_v21 = vmul.f32 %v2031_v30, %v586_v37 }
 0x1d4   :  { %v542_v40 = vadd.f32 1e-05, %v526_v61  ;;  %v627_v57 = vadd.f32 %v2044_v18, %v607_v52 }
 0x1d5   :  { %1605 = vrsqrt.f32 %v543_v1  ;;  %1419 = vmatprep.mubr.msk.bf16.mxu1 %vm350_vm1, %v636_v19  ;;  %v626_v41 = vadd.f32 %v2044_v18, %v606_v21 }
 0x1d6   :  { %1607 = vrsqrt.f32 %v542_v40 }
 0x1d7   :  { %v637_v42 = vpack.c.bf16 %v627_v57, %v626_v41 }
 0x1d9   :  { %1420 = vmatmul.mubr.msk.bf16.gmra.mrb[8].mxu1 %vm350_vm1, %v637_v42 }
 0x1db   :  { %v1602_v45 = vpop.eup %1601 }
 0x1dc   :  { %v1604_v47 = vpop.eup %1603  ;;  %v589_v50 = vmul.f32 %v1602_v45, %v573_v43 }
 0x1dd   :  { %v588_v51 = vmul.f32 %v1604_v47, %v572_v46 }
 0x1de   :  { %v609_v56 = vmul.f32 %v2031_v30, %v589_v50 }
 0x1df   :  { %v1606_v44 = vpop.eup %1605  ;;  %v608_v2 = vmul.f32 %v2031_v30, %v588_v51 }
 0x1e0   :  { %v1608_v5 = vpop.eup %1607  ;;  %v629_v6 = vadd.f32 %v2044_v18, %v609_v56  ;;  %v591_v58 = vmul.f32 %v1606_v44, %v575_v16 }
 0x1e1   :  { %v628_v60 = vadd.f32 %v2044_v18, %v608_v2  ;;  %v590_v28 = vmul.f32 %v1608_v5, %v574_v38 }
 0x1e2   :  { %v611_v0 = vmul.f32 %v2031_v30, %v591_v58 }
 0x1e3   :  { %v638_v12 = vpack.c.bf16 %v629_v6, %v628_v60  ;;  %v610_v11 = vmul.f32 %v2031_v30, %v590_v28 }
 0x1e4   :  { %v631_v49 = vadd.f32 %v2044_v18, %v611_v0 }
 0x1e5   :  { %1423 = vmatprep.mubr.msk.bf16.mxu1 %vm350_vm1, %v638_v12  ;;  %v630_v55 = vadd.f32 %v2044_v18, %v610_v11 }
 0x1e7   :  { %v639_v4 = vpack.c.bf16 %v631_v49, %v630_v55 }
 0x1e9   :  { %1424 = vmatmul.mubr.msk.bf16.gmra.mrb[12].mxu1 %vm350_vm1, %v639_v4 }
 0x28c   :  { %v1413_v30 = vpop.f32.mrb[0].mxu1 }
 0x28d   :  { %v2146_v17 = vadd.f32 %v1413_v30, %v2143_v9  ;;  %v710_v20 = vpop.f32.mrb[1].mxu1 }
 0x28e   :  { %v711_v18 = vadd.f32 %v710_v20, %v2143_v9  ;;  %v1414_v59 = vpop.f32.mrb[2].mxu1 }
 0x28f   :  { %v1316_v35 = vmul.f32 -1.442695, %v2146_v17  ;;  %v2151_v23 = vadd.f32 %v1414_v59, %v2143_v9  ;;  %v713_v27 = vpop.f32.mrb[3].mxu1 }
 0x290   :  { %v1314_v62 = vmul.f32 -1.442695, %v711_v18  ;;  %v714_v13 = vadd.f32 %v713_v27, %v2143_v9 }
 0x291   :  { %1609 = vpow2.f32 %v1316_v35  ;;  %v1317_v14 = vmul.f32 -1.442695, %v2151_v23 }
 0x292   :  { %1611 = vpow2.f32 %v1314_v62  ;;  %v1315_v33 = vmul.f32 -1.442695, %v714_v13 }
 0x293   :  { %1613 = vpow2.f32 %v1317_v14 }
 0x294   :  { %1615 = vpow2.f32 %v1315_v33 }
 0x29b   :  { %v1610_v39 = vpop.eup %1609 }
 0x29c   :  { %v1612_v25 = vpop.eup %1611  ;;  %v823_v36 = vadd.f32 1.0, %v1610_v39  ;;  %v1417_v32 = vpop.f32.mrb[4].mxu1 }
 0x29d   :  { %v1614_v29 = vpop.eup %1613  ;;  %v821_v31 = vadd.f32 1.0, %v1612_v25  ;;  %v2156_v15 = vadd.f32 %v1417_v32, %v2143_v9  ;;  %v726_v54 = vpop.f32.mrb[5].mxu1 }
 0x29e   :  { %v1616_v34 = vpop.eup %1615  ;;  %v2159_v53 = vadd.f32 %v726_v54, %v2143_v9  ;;  %v1418_v8 = vpop.f32.mrb[6].mxu1  ;;  %v824_v26 = vadd.f32 1.0, %v1614_v29 }
 0x29f   :  { %1617 = vrcp.f32 %v821_v31  ;;  %v822_v22 = vadd.f32 1.0, %v1616_v34  ;;  %v1320_v3 = vmul.f32 -1.442695, %v2156_v15  ;;  %v2163_v24 = vadd.f32 %v1418_v8, %v2143_v9  ;;  %v729_v48 = vpop.f32.mrb[7].mxu1 }
 0x2a0   :  { %1619 = vrcp.f32 %v823_v36  ;;  %v1318_v7 = vmul.f32 -1.442695, %v2159_v53  ;;  %v2167_v63 = vadd.f32 %v729_v48, %v2143_v9 }
 0x2a1   :  { %1621 = vrcp.f32 %v822_v22  ;;  %v1321_v37 = vmul.f32 -1.442695, %v2163_v24 }
 0x2a2   :  { %1623 = vpow2.f32 %v1320_v3  ;;  %v1319_v61 = vmul.f32 -1.442695, %v2167_v63 }
 0x2a3   :  { %1625 = vpow2.f32 %v1318_v7 }
 0x2a4   :  { %1627 = vrcp.f32 %v824_v26 }
 0x2a5   :  { %1629 = vpow2.f32 %v1319_v61 }
 0x2a6   :  { %1631 = vpow2.f32 %v1321_v37 }
 0x2a9   :  { %v1618_v52 = vpop.eup %1617 }
 0x2aa   :  { %v1620_v1 = vpop.eup %1619  ;;  %v2171_v19 = vmul.f32 %v1618_v52, %v711_v18 }
 0x2ab   :  { %v1622_v21 = vpop.eup %1621  ;;  %v2188_v5 = vmul.f32 %v1620_v1, %v2146_v17 }
 0x2ac   :  { %v1624_v40 = vpop.eup %1623  ;;  %v2173_v57 = vmul.f32 %v1622_v21, %v714_v13  ;;  %v1421_v41 = vpop.f32.mrb[8].mxu1  ;;  %v886_v42 = vsel %vm885_vm2, %v2171_v19, 0.0  ;;  %v951_v43 = vmul.f32 %v2171_v19, %v2171_v19 }
 0x2ad   :  { %v1626_v45 = vpop.eup %1625  ;;  %v827_v46 = vadd.f32 1.0, %v1624_v40  ;;  %v2180_v47 = vadd.f32 %v1421_v41, %v2143_v9  ;;  %887 = vadd.xlane.f32.xlu0 %v886_v42  ;;  %v742_v50 = vpop.f32.mrb[9].mxu1  ;;  %v892_v59 = vsel %vm885_vm2, %v2188_v5, 0.0  ;;  %v953_v35 = vmul.f32 %v2188_v5, %v2188_v5 }
 0x2ae   :  { %v1628_v51 = vpop.eup %1627  ;;  %v825_v16 = vadd.f32 1.0, %v1626_v45  ;;  %v2183_v56 = vadd.f32 %v742_v50, %v2143_v9  ;;  %v1422_v44 = vpop.f32.mrb[10].mxu1  ;;  %v889_v38 = vsel %vm885_vm2, %v2173_v57, 0.0  ;;  %v967_v28 = vsel %vm885_vm2, %v951_v43, 0.0 }
 0x2af   :  { %v1630_v2 = vpop.eup %1629  ;;  %v1324_v6 = vmul.f32 -1.442695, %v2180_v47  ;;  %v2192_v58 = vadd.f32 %v1422_v44, %v2143_v9  ;;  %890 = vadd.xlane.f32.xlu1 %v889_v38  ;;  %v745_v60 = vpop.f32.mrb[11].mxu1  ;;  %v952_v4 = vmul.f32 %v2173_v57, %v2173_v57  ;;  %v2204_v17 = vmul.f32 %v1628_v51, %v2151_v23 }
 0x2b0   :  { %v1632_v0 = vpop.eup %1631  ;;  %1633 = vrcp.f32 %v825_v16  ;;  %v826_v12 = vadd.f32 1.0, %v1630_v2  ;;  %v1322_v11 = vmul.f32 -1.442695, %v2183_v56  ;;  %v2197_v49 = vadd.f32 %v745_v60, %v2143_v9 }
 0x2b1   :  { %1635 = vrcp.f32 %v827_v46  ;;  %v1325_v55 = vmul.f32 -1.442695, %v2192_v58  ;;  %968 = vadd.xlane.f32.xlu0 %v967_v28  ;;  %v828_v20 = vadd.f32 1.0, %v1632_v0  ;;  %v970_v18 = vsel %vm885_vm2, %v952_v4, 0.0 }
 0x2b2   :  { %1637 = vrcp.f32 %v826_v12  ;;  %v1323_v30 = vmul.f32 -1.442695, %v2197_v49  ;;  %v895_v23 = vsel %vm885_vm2, %v2204_v17, 0.0  ;;  %v954_v27 = vmul.f32 %v2204_v17, %v2204_v17 }
 0x2b3   :  { %1639 = vpow2.f32 %v1324_v6  ;;  %971 = vadd.xlane.f32.xlu1 %v970_v18  ;;  %v973_v62 = vsel %vm885_vm2, %v953_v35, 0.0 }
 0x2b4   :  { %1641 = vpow2.f32 %v1322_v11  ;;  %v976_v39 = vsel %vm885_vm2, %v954_v27, 0.0 }
 0x2b5   :  { %1643 = vpow2.f32 %v1325_v55  ;;  %893 = vadd.xlane.f32.xlu0 %v892_v59 }
 0x2b6   :  { %1645 = vpow2.f32 %v1323_v30 }
 0x2b7   :  { %1647 = vrcp.f32 %v828_v20  ;;  %896 = vadd.xlane.f32.xlu1 %v895_v23 }
 0x2b9   :  { %974 = vadd.xlane.f32.xlu0 %v973_v62 }
 0x2ba   :  { %v1634_v13 = vpop.eup %1633 }
 0x2bb   :  { %v1636_v14 = vpop.eup %1635  ;;  %v2217_v33 = vmul.f32 %v1634_v13, %v2159_v53  ;;  %977 = vadd.xlane.f32.xlu1 %v976_v39 }
 0x2bc   :  { %v1638_v25 = vpop.eup %1637  ;;  %v1425_v36 = vpop.f32.mrb[12].mxu1  ;;  %v2234_v7 = vmul.f32 %v1636_v14, %v2156_v15 }
 0x2bd   :  { %v1640_v32 = vpop.eup %1639  ;;  %v2221_v29 = vmul.f32 %v1638_v25, %v2167_v63  ;;  %v2224_v31 = vadd.f32 %v1425_v36, %v2143_v9  ;;  %v898_v54 = vsel %vm885_vm2, %v2217_v33, 0.0  ;;  %v758_v34 = vpop.f32.mrb[13].mxu1  ;;  %v955_v53 = vmul.f32 %v2217_v33, %v2217_v33 }
 0x2be   :  { %v1642_v8 = vpop.eup %1641  ;;  %v831_v22 = vadd.f32 1.0, %v1640_v32  ;;  %899 = vadd.xlane.f32.xlu0 %v898_v54  ;;  %v2231_v3 = vadd.f32 %v758_v34, %v2143_v9  ;;  %v1426_v48 = vpop.f32.mrb[14].mxu1  ;;  %v904_v44 = vsel %vm885_vm2, %v2234_v7, 0.0  ;;  %v957_v38 = vmul.f32 %v2234_v7, %v2234_v7 }
 0x2bf   :  { %v1644_v26 = vpop.eup %1643  ;;  %v829_v63 = vadd.f32 1.0, %v1642_v8  ;;  %v2237_v37 = vadd.f32 %v1426_v48, %v2143_v9  ;;  %v901_v61 = vsel %vm885_vm2, %v2221_v29, 0.0  ;;  %v761_v52 = vpop.f32.mrb[15].mxu1  ;;  %v1328_v40 = vmul.f32 -1.442695, %v2224_v31 }
 0x2c0   :  { %v1646_v1 = vpop.eup %1645  ;;  %1649 = vrcp.f32 %v831_v22  ;;  %v832_v21 = vadd.f32 1.0, %v1644_v26  ;;  %902 = vadd.xlane.f32.xlu1 %v901_v61  ;;  %v2243_v41 = vadd.f32 %v761_v52, %v2143_v9  ;;  %v1326_v43 = vmul.f32 -1.442695, %v2231_v3 }
 0x2c1   :  { %v1648_v42 = vpop.eup %1647  ;;  %1651 = vrcp.f32 %v829_v63  ;;  %v830_v15 = vadd.f32 1.0, %v1646_v1  ;;  %v979_v45 = vsel %vm885_vm2, %v955_v53, 0.0  ;;  %v1329_v46 = vmul.f32 -1.442695, %v2237_v37 }
 0x2c2   :  { %1653 = vrcp.f32 %v832_v21  ;;  %980 = vadd.xlane.f32.xlu0 %v979_v45  ;;  %v956_v50 = vmul.f32 %v2221_v29, %v2221_v29  ;;  %v1327_v51 = vmul.f32 -1.442695, %v2243_v41  ;;  %v2252_v9 = vmul.f32 %v1648_v42, %v2163_v24 }
 0x2c3   :  { %1655 = vrcp.f32 %v830_v15  ;;  %v985_v6 = vsel %vm885_vm2, %v957_v38, 0.0  ;;  %v1729_v8 = vmov 0.0|0.0   ;;  %v1732_v38 = vmov 0  }
 0x2c4   :  { %1657 = vpow2.f32 %v1328_v40  ;;  %v982_v16 = vsel %vm885_vm2, %v956_v50, 0.0  ;;  %v907_v2 = vsel %vm885_vm2, %v2252_v9, 0.0  ;;  %v958_v24 = vmul.f32 %v2252_v9, %v2252_v9  ;;  %1462 = vmatprep.subr.bf16.mxu1 %v1729_v8  ;;  %1499 = vset.pattern.permute.xlu0 %v1732_v38 }
 0x2c5   :  { %1659 = vpow2.f32 %v1326_v43  ;;  %983 = vadd.xlane.f32.xlu1 %v982_v16 }
 0x2c6   :  { %1661 = vpow2.f32 %v1329_v46  ;;  %905 = vadd.xlane.f32.xlu0 %v904_v44  ;;  %v988_v11 = vsel %vm885_vm2, %v958_v24, 0.0  ;;  %v1731_v44 = vmov 0.0  }
 0x2c7   :  { %1663 = vpow2.f32 %v1327_v51  ;;  %1459 = vmatprep.mubr.msk.f32.mxu1 %vm1730_vm3, %v1731_v44 }
 0x2c9   :  { %908 = vadd.xlane.f32.xlu1 %v907_v2 }
 0x2ca   :  { %v1650_v60 = vpop.eup %1649  ;;  %986 = vadd.xlane.f32.xlu0 %v985_v6 }
 0x2cb   :  { %v1652_v28 = vpop.eup %1651 }
 0x2cc   :  { %v1654_v0 = vpop.eup %1653  ;;  %v2265_v12 = vmul.f32 %v1652_v28, %v2183_v56 }
 0x2cd   :  { %v1656_v55 = vpop.eup %1655  ;;  %989 = vadd.xlane.f32.xlu1 %v988_v11  ;;  %v2284_v25 = vmul.f32 %v1654_v0, %v2192_v58 }
 0x2ce   :  { %v1658_v4 = vpop.eup %1657  ;;  %v2269_v30 = vmul.f32 %v1656_v55, %v2197_v49  ;;  %v910_v20 = vsel %vm885_vm2, %v2265_v12, 0.0  ;;  %v959_v18 = vmul.f32 %v2265_v12, %v2265_v12  ;;  %v2280_v49 = vmul.f32 %v1650_v60, %v2180_v47 }
 0x2cf   :  { %v1660_v59 = vpop.eup %1659  ;;  %911 = vadd.xlane.f32.xlu0 %v910_v20  ;;  %v835_v13 = vadd.f32 1.0, %v1658_v4  ;;  %v919_v34 = vsel %vm885_vm2, %v2284_v25, 0.0  ;;  %v962_v58 = vmul.f32 %v2284_v25, %v2284_v25 }
 0x2d0   :  { %v1662_v35 = vpop.eup %1661  ;;  %v833_v23 = vadd.f32 1.0, %v1660_v59  ;;  %v913_v56 = vsel %vm885_vm2, %v2269_v30, 0.0  ;;  %v960_v27 = vmul.f32 %v2269_v30, %v2269_v30  ;;  %v991_v39 = vsel %vm885_vm2, %v959_v18, 0.0 }
 0x2d1   :  { %v1664_v62 = vpop.eup %1663  ;;  %914 = vadd.xlane.f32.xlu1 %v913_v56  ;;  %v836_v36 = vadd.f32 1.0, %v1662_v35  ;;  %v916_v47 = vsel %vm885_vm2, %v2280_v49, 0.0  ;;  %v961_v54 = vmul.f32 %v2280_v49, %v2280_v49  ;;  %v1000_v48 = vsel %vm885_vm2, %v962_v58, 0.0 }
 0x2d2   :  { %1665 = vrcp.f32 %v833_v23  ;;  %v834_v14 = vadd.f32 1.0, %v1664_v62  ;;  %v994_v32 = vsel %vm885_vm2, %v960_v27, 0.0 }
 0x2d3   :  { %992 = vadd.xlane.f32.xlu0 %v991_v39  ;;  %v997_v53 = vsel %vm885_vm2, %v961_v54, 0.0 }
 0x2d4   :  { %1667 = vrcp.f32 %v834_v14 }
 0x2d5   :  { %995 = vadd.xlane.f32.xlu1 %v994_v32  ;;  %1669 = vrcp.f32 %v835_v13 }
 0x2d6   :  { %1671 = vrcp.f32 %v836_v36 }
 0x2d7   :  { %917 = vadd.xlane.f32.xlu0 %v916_v47 }
 0x2d9   :  { %920 = vadd.xlane.f32.xlu1 %v919_v34 }
 0x2db   :  { %998 = vadd.xlane.f32.xlu0 %v997_v53 }
 0x2dc   :  { %v1666_v22 = vpop.eup %1665 }
 0x2dd   :  { %v2299_v26 = vmul.f32 %v1666_v22, %v2231_v3  ;;  %1001 = vadd.xlane.f32.xlu1 %v1000_v48 }
 0x2de   :  { %v1668_v63 = vpop.eup %1667 }
 0x2df   :  { %v2302_v61 = vmul.f32 %v1668_v63, %v2243_v41  ;;  %v922_v52 = vsel %vm885_vm2, %v2299_v26, 0.0  ;;  %v963_v1 = vmul.f32 %v2299_v26, %v2299_v26  ;;  %v1670_v21 = vpop.eup %1669 }
 0x2e0   :  { %923 = vadd.xlane.f32.xlu0 %v922_v52  ;;  %v1672_v42 = vpop.eup %1671  ;;  %v2313_v15 = vmul.f32 %v1670_v21, %v2224_v31 }
 0x2e1   :  { %v925_v40 = vsel %vm885_vm2, %v2302_v61, 0.0  ;;  %v964_v3 = vmul.f32 %v2302_v61, %v2302_v61  ;;  %v1003_v41 = vsel %vm885_vm2, %v963_v1, 0.0  ;;  %v2317_v43 = vmul.f32 %v1672_v42, %v2237_v37 }
 0x2e2   :  { %926 = vadd.xlane.f32.xlu1 %v925_v40  ;;  %v928_v46 = vsel %vm885_vm2, %v2313_v15, 0.0  ;;  %v965_v50 = vmul.f32 %v2313_v15, %v2313_v15 }
 0x2e3   :  { %v1006_v45 = vsel %vm885_vm2, %v964_v3, 0.0  ;;  %v931_v31 = vsel %vm885_vm2, %v2317_v43, 0.0  ;;  %v966_v51 = vmul.f32 %v2317_v43, %v2317_v43 }
 0x2e4   :  { %1004 = vadd.xlane.f32.xlu0 %v1003_v41  ;;  %v1009_v37 = vsel %vm885_vm2, %v965_v50, 0.0 }
 0x2e5   :  { %v1012_v16 = vsel %vm885_vm2, %v966_v51, 0.0 }
 0x2e6   :  { %1007 = vadd.xlane.f32.xlu1 %v1006_v45 }
 0x2e8   :  { %929 = vadd.xlane.f32.xlu0 %v928_v46 }
 0x2ea   :  { %932 = vadd.xlane.f32.xlu1 %v931_v31 }
 0x2ec   :  { %1010 = vadd.xlane.f32.xlu0 %v1009_v37 }
 0x2ee   :  { %1013 = vadd.xlane.f32.xlu1 %v1012_v16 }
 0x302   :  { %1129 = vperm.xlu0 %1499, %v2138_v10  }
 0x33a   :  { %v888_v2 = vpop.xlane.xlu0 %887 }
 0x33b   :  { %v935_v24 = vmul.f32 0.25, %v888_v2 }
 0x33c   :  { %v891_v6 = vpop.xlane.xlu1 %890 }
 0x33d   :  { %v936_v60 = vmul.f32 0.25, %v891_v6  ;;  %v1031_v0 = vmul.f32 %v935_v24, %v935_v24  ;;  %v1095_v41 = vsub.f32 %v2171_v19, %v935_v24 }
 0x33e   :  { %v969_v28 = vpop.xlane.xlu0 %968 }
 0x33f   :  { %v1015_v11 = vmul.f32 0.25, %v969_v28  ;;  %v1032_v20 = vmul.f32 %v936_v60, %v936_v60  ;;  %v1096_v45 = vsub.f32 %v2173_v57, %v936_v60 }
 0x340   :  { %v972_v4 = vpop.xlane.xlu1 %971 }
 0x341   :  { %v1047_v55 = vsub.f32 %v1015_v11, %v1031_v0  ;;  %v1016_v18 = vmul.f32 0.25, %v972_v4 }
 0x342   :  { %v894_v59 = vpop.xlane.xlu0 %893 }
 0x343   :  { %v1063_v35 = vadd.f32 1e-05, %v1047_v55  ;;  %v937_v23 = vmul.f32 0.25, %v894_v59  ;;  %v1048_v56 = vsub.f32 %v1016_v18, %v1032_v20 }
 0x344   :  { %v897_v27 = vpop.xlane.xlu1 %896 }
 0x345   :  { %1673 = vrsqrt.f32 %v1063_v35  ;;  %v1064_v62 = vadd.f32 1e-05, %v1048_v56  ;;  %v938_v13 = vmul.f32 0.25, %v897_v27  ;;  %v1033_v39 = vmul.f32 %v937_v23, %v937_v23 }
 0x346   :  { %v975_v14 = vpop.xlane.xlu0 %974  ;;  %v1097_v18 = vsub.f32 %v2188_v5, %v937_v23 }
 0x347   :  { %v1017_v36 = vmul.f32 0.25, %v975_v14  ;;  %1675 = vrsqrt.f32 %v1064_v62  ;;  %v1034_v54 = vmul.f32 %v938_v13, %v938_v13  ;;  %v1098_v59 = vsub.f32 %v2204_v17, %v938_v13 }
 0x348   :  { %v978_v47 = vpop.xlane.xlu1 %977 }
 0x349   :  { %v1049_v32 = vsub.f32 %v1017_v36, %v1033_v39  ;;  %v1018_v34 = vmul.f32 0.25, %v978_v47 }
 0x34b   :  { %v1065_v58 = vadd.f32 1e-05, %v1049_v32  ;;  %v900_v53 = vpop.xlane.xlu0 %899  ;;  %v1050_v22 = vsub.f32 %v1018_v34, %v1034_v54 }
 0x34c   :  { %v2331_v48 = vmul.f32 0.25, %v900_v53 }
 0x34d   :  { %v903_v63 = vpop.xlane.xlu1 %902  ;;  %1677 = vrsqrt.f32 %v1065_v58  ;;  %v1066_v52 = vadd.f32 1e-05, %v1050_v22 }
 0x34e   :  { %v2333_v1 = vmul.f32 0.25, %v903_v63  ;;  %v1035_v3 = vmul.f32 %v2331_v48, %v2331_v48 }
 0x34f   :  { %v981_v21 = vpop.xlane.xlu0 %980  ;;  %v1674_v40 = vpop.eup %1673  ;;  %1679 = vrsqrt.f32 %v1066_v52  ;;  %v1099_v52 = vsub.f32 %v2217_v33, %v2331_v48 }
 0x350   :  { %v1019_v42 = vmul.f32 0.25, %v981_v21  ;;  %v1036_v51 = vmul.f32 %v2333_v1, %v2333_v1  ;;  %v1111_v44 = vmul.f32 %v1674_v40, %v1095_v41  ;;  %v1100_v21 = vsub.f32 %v2221_v29, %v2333_v1 }
 0x351   :  { %v1676_v46 = vpop.eup %1675 }
 0x352   :  { %v1051_v50 = vsub.f32 %v1019_v42, %v1035_v3  ;;  %v984_v31 = vpop.xlane.xlu1 %983  ;;  %v1112_v38 = vmul.f32 %v1676_v46, %v1096_v45 }
 0x353   :  { %v1020_v37 = vmul.f32 0.25, %v984_v31  ;;  %v906_v16 = vpop.xlane.xlu0 %905 }
 0x354   :  { %v1067_v2 = vadd.f32 1e-05, %v1051_v50  ;;  %v2341_v6 = vmul.f32 0.25, %v906_v16  ;;  %v1463_v57 = vpack.c.bf16 %v1112_v38, %v1111_v44 }
 0x355   :  { %v1052_v19 = vsub.f32 %v1020_v37, %v1036_v51 }
 0x356   :  { %v909_v24 = vpop.xlane.xlu1 %908  ;;  %1681 = vrsqrt.f32 %v1067_v2  ;;  %1465 = vmatpush3.bf16.xpose.msk.msra.mxu1 %vm2345_vm4, %v1463_v57  ;;  %v1037_v4 = vmul.f32 %v2341_v6, %v2341_v6  ;;  %v1101_v57 = vsub.f32 %v2234_v7, %v2341_v6 }
 0x357   :  { %v1068_v60 = vadd.f32 1e-05, %v1052_v19  ;;  %v2349_v0 = vmul.f32 0.25, %v909_v24  ;;  %v987_v11 = vpop.xlane.xlu0 %986  ;;  %v1678_v55 = vpop.eup %1677  ;;  %1466 = vmatprep.subr.bf16.mxu1 %v1729_v8 }
 0x358   :  { %v1021_v20 = vmul.f32 0.25, %v987_v11  ;;  %v1113_v39 = vmul.f32 %v1678_v55, %v1097_v18 }
 0x359   :  { %1683 = vrsqrt.f32 %v1068_v60  ;;  %v1680_v35 = vpop.eup %1679  ;;  %v1038_v62 = vmul.f32 %v2349_v0, %v2349_v0  ;;  %v1102_v24 = vsub.f32 %v2252_v9, %v2349_v0 }
 0x35a   :  { %v1053_v56 = vsub.f32 %v1021_v20, %v1037_v4  ;;  %v990_v27 = vpop.xlane.xlu1 %989  ;;  %v1114_v36 = vmul.f32 %v1680_v35, %v1098_v59 }
 0x35b   :  { %v1022_v14 = vmul.f32 0.25, %v990_v27 }
 0x35c   :  { %v1069_v32 = vadd.f32 1e-05, %v1053_v56  ;;  %v912_v47 = vpop.xlane.xlu0 %911  ;;  %v1467_v58 = vpack.c.bf16 %v1114_v36, %v1113_v39 }
 0x35d   :  { %v1054_v54 = vsub.f32 %v1022_v14, %v1038_v62  ;;  %v2360_v34 = vmul.f32 0.25, %v912_v47 }
 0x35e   :  { %v915_v53 = vpop.xlane.xlu1 %914  ;;  %1685 = vrsqrt.f32 %v1069_v32  ;;  %1469 = vmatpush3.bf16.xpose.msk.msra.mxu1 %vm2345_vm4, %v1467_v58 }
 0x35f   :  { %v1070_v5 = vadd.f32 1e-05, %v1054_v54  ;;  %v2362_v17 = vmul.f32 0.25, %v915_v53  ;;  %1470 = vmatprep.subr.bf16.mxu1 %v1729_v8  ;;  %v1039_v22 = vmul.f32 %v2360_v34, %v2360_v34  ;;  %v1103_v36 = vsub.f32 %v2265_v12, %v2360_v34 }
 0x360   :  { %v993_v23 = vpop.xlane.xlu0 %992  ;;  %v1682_v13 = vpop.eup %1681 }
 0x361   :  { %1687 = vrsqrt.f32 %v1070_v5  ;;  %v1023_v63 = vmul.f32 0.25, %v993_v23  ;;  %v1040_v42 = vmul.f32 %v2362_v17, %v2362_v17  ;;  %v1115_v50 = vmul.f32 %v1682_v13, %v1099_v52 }
 0x362   :  { %v996_v40 = vpop.xlane.xlu1 %995  ;;  %v1104_v32 = vsub.f32 %v2269_v30, %v2362_v17 }
 0x363   :  { %v1684_v3 = vpop.eup %1683  ;;  %v1055_v41 = vsub.f32 %v1023_v63, %v1039_v22  ;;  %v1024_v45 = vmul.f32 0.25, %v996_v40 }
 0x364   :  { %v918_v46 = vpop.xlane.xlu0 %917  ;;  %v1116_v31 = vmul.f32 %v1684_v3, %v1100_v21 }
 0x365   :  { %v1071_v51 = vadd.f32 1e-05, %v1055_v41  ;;  %v1056_v37 = vsub.f32 %v1024_v45, %v1040_v42  ;;  %v2375_v16 = vmul.f32 0.25, %v918_v46 }
 0x366   :  { %v921_v44 = vpop.xlane.xlu1 %920  ;;  %v1471_v38 = vpack.c.bf16 %v1116_v31, %v1115_v50 }
 0x367   :  { %1689 = vrsqrt.f32 %v1071_v51  ;;  %v1072_v33 = vadd.f32 1e-05, %v1056_v37  ;;  %v2377_v48 = vmul.f32 0.25, %v921_v44  ;;  %v1041_v2 = vmul.f32 %v2375_v16, %v2375_v16 }
 0x368   :  { %1473 = vmatpush3.bf16.xpose.msk.msra.mxu1 %vm2345_vm4, %v1471_v38  ;;  %v999_v29 = vpop.xlane.xlu0 %998  ;;  %v1686_v1 = vpop.eup %1685  ;;  %v1105_v34 = vsub.f32 %v2280_v49, %v2375_v16 }
 0x369   :  { %1691 = vrsqrt.f32 %v1072_v33  ;;  %v1025_v19 = vmul.f32 0.25, %v999_v29  ;;  %1474 = vmatprep.subr.bf16.mxu1 %v1729_v8  ;;  %v1042_v55 = vmul.f32 %v2377_v48, %v2377_v48  ;;  %v1117_v18 = vmul.f32 %v1686_v1, %v1101_v57 }
 0x36a   :  { %v1002_v60 = vpop.xlane.xlu1 %1001  ;;  %v1106_v46 = vsub.f32 %v2284_v25, %v2377_v48 }
 0x36b   :  { %v1688_v11 = vpop.eup %1687  ;;  %v1057_v4 = vsub.f32 %v1025_v19, %v1041_v2  ;;  %v1026_v20 = vmul.f32 0.25, %v1002_v60 }
 0x36c   :  { %v1118_v59 = vmul.f32 %v1688_v11, %v1102_v24 }
 0x36d   :  { %v1073_v35 = vadd.f32 1e-05, %v1057_v4  ;;  %v1058_v56 = vsub.f32 %v1026_v20, %v1042_v55  ;;  %v924_v27 = vpop.xlane.xlu0 %923 }
 0x36e   :  { %v947_v62 = vmul.f32 0.25, %v924_v27  ;;  %v1475_v14 = vpack.c.bf16 %v1118_v59, %v1117_v18 }
 0x36f   :  { %1693 = vrsqrt.f32 %v1073_v35  ;;  %v1074_v39 = vadd.f32 1e-05, %v1058_v56  ;;  %v927_v7 = vpop.xlane.xlu1 %926 }
 0x370   :  { %v948_v6 = vmul.f32 0.25, %v927_v7  ;;  %1477 = vmatpush3.bf16.xpose.msk.msra.mxu1 %vm2345_vm4, %v1475_v14  ;;  %v1043_v47 = vmul.f32 %v947_v62, %v947_v62  ;;  %v1107_v48 = vsub.f32 %v2299_v26, %v947_v62 }
 0x371   :  { %v1690_v9 = vpop.eup %1689  ;;  %1695 = vrsqrt.f32 %v1074_v39  ;;  %v1005_v0 = vpop.xlane.xlu0 %1004  ;;  %1478 = vmatprep.subr.bf16.mxu1 %v1729_v8 }
 0x372   :  { %v1027_v54 = vmul.f32 0.25, %v1005_v0  ;;  %v1044_v53 = vmul.f32 %v948_v6, %v948_v6  ;;  %v1119_v22 = vmul.f32 %v1690_v9, %v1103_v36  ;;  %v1108_v57 = vsub.f32 %v2302_v61, %v948_v6 }
 0x373   :  { %v1692_v58 = vpop.eup %1691  ;;  %v1008_v5 = vpop.xlane.xlu1 %1007  ;;  %v1131_v61 = vrot.slane %v2138_v10, 1 }
 0x374   :  { %v1059_v23 = vsub.f32 %v1027_v54, %v1043_v47  ;;  %v1028_v13 = vmul.f32 0.25, %v1008_v5  ;;  %v1120_v63 = vmul.f32 %v1692_v58, %v1104_v32 }
 0x375   :  { %v930_v52 = vpop.xlane.xlu0 %929 }
 0x376   :  { %v1075_v21 = vadd.f32 1e-05, %v1059_v23  ;;  %v1060_v40 = vsub.f32 %v1028_v13, %v1044_v53  ;;  %v949_v3 = vmul.f32 0.25, %v930_v52  ;;  %v1479_v42 = vpack.c.bf16 %v1120_v63, %v1119_v22 }
 0x377   :  { %v933_v41 = vpop.xlane.xlu1 %932 }
 0x378   :  { %1697 = vrsqrt.f32 %v1075_v21  ;;  %v1076_v12 = vadd.f32 1e-05, %v1060_v40  ;;  %1481 = vmatpush3.bf16.xpose.msk.msra.mxu1 %vm2345_vm4, %v1479_v42  ;;  %v950_v17 = vmul.f32 0.25, %v933_v41  ;;  %v1045_v50 = vmul.f32 %v949_v3, %v949_v3 }
 0x379   :  { %v1694_v30 = vpop.eup %1693  ;;  %v1011_v45 = vpop.xlane.xlu0 %1010  ;;  %1482 = vmatprep.subr.bf16.mxu1 %v1729_v8  ;;  %v1109_v20 = vsub.f32 %v2313_v15, %v949_v3 }
 0x37a   :  { %1699 = vrsqrt.f32 %v1076_v12  ;;  %v1029_v31 = vmul.f32 0.25, %v1011_v45  ;;  %v1121_v44 = vmul.f32 %v1694_v30, %v1105_v34  ;;  %v1046_v38 = vmul.f32 %v950_v17, %v950_v17 }
 0x37b   :  { %v1696_v51 = vpop.eup %1695  ;;  %v1014_v37 = vpop.xlane.xlu1 %1013  ;;  %v1110_v18 = vsub.f32 %v2317_v43, %v950_v17 }
 0x37c   :  { %v1061_v33 = vsub.f32 %v1029_v31, %v1045_v50  ;;  %v1030_v29 = vmul.f32 0.25, %v1014_v37  ;;  %v1122_v1 = vmul.f32 %v1696_v51, %v1106_v46 }
 0x37e   :  { %v1077_v2 = vadd.f32 1e-05, %v1061_v33  ;;  %v1062_v19 = vsub.f32 %v1030_v29, %v1046_v38  ;;  %v1483_v49 = vpack.c.bf16 %v1122_v1, %v1121_v44 }
 0x380   :  { %1701 = vrsqrt.f32 %v1077_v2  ;;  %v1078_v16 = vadd.f32 1e-05, %v1062_v19  ;;  %1485 = vmatpush3.bf16.xpose.msk.msra.mxu1 %vm2345_vm4, %v1483_v49 }
 0x381   :  { %1486 = vmatprep.subr.bf16.mxu1 %v1729_v8  ;;  %v1130_v27 = vpop.permute.xlu0 %1129 }
 0x382   :  { %v1698_v25 = vpop.eup %1697  ;;  %1703 = vrsqrt.f32 %v1078_v16  ;;  %v1132_v62 = vrot.slane %v1130_v27, 2 }
 0x383   :  { %v1123_v60 = vmul.f32 %v1698_v25, %v1107_v48 }
 0x384   :  { %v1700_v24 = vpop.eup %1699 }
 0x385   :  { %v1124_v11 = vmul.f32 %v1700_v24, %v1108_v57 }
 0x387   :  { %v1487_v55 = vpack.c.bf16 %v1124_v11, %v1123_v60 }
 0x389   :  { %1489 = vmatpush3.bf16.xpose.msk.msra.mxu1 %vm2345_vm4, %v1487_v55 }
 0x38a   :  { %v1702_v4 = vpop.eup %1701  ;;  %1490 = vmatprep.subr.bf16.mxu1 %v1729_v8 }
 0x38b   :  { %v1125_v56 = vmul.f32 %v1702_v4, %v1109_v20 }
 0x38c   :  { %v1704_v59 = vpop.eup %1703 }
 0x38d   :  { %v1126_v35 = vmul.f32 %v1704_v59, %v1110_v18 }
 0x38f   :  { %v1491_v26 = vpack.c.bf16 %v1126_v35, %v1125_v56 }
 0x391   :  { %1493 = vmatpush3.bf16.xpose.msk.msra.mxu1 %vm2345_vm4, %v1491_v26 }
 0x398   :  { %1460 = vmatmul.mubr.msk.f32.vlgmr.msra.gmra.mrb[16].mxu1 %vm885_vm2, %v1131_v61 }
 0x46b   :  { %v1250_v8 = vpop.f32.mrb[16].mxu1 }
 0x46c   :  { %v1251_v14 = vadd.f32 %v1250_v8, %v1132_v62  ;;  %v1461_v15 = vpop.f32.mrb[17].mxu1 }
 0x46e   :  { %1254 = vst [vmem:[#allocation2] sm:$0x1] %v1251_v14 }
 0x46f   :  { %1716 = shalt.err (!%p1713_p4)
}
 0x470   :  { %s1717_s24 = scalar_lea.hbm %s2435_s5, 16 }
 0x471   :  { %p1718_p5 = scmp.ne.s32.totalorder %s2435_s5, %s1717_s24  ;;  %p1721_p6 = scmp.lt.u32.totalorder %s1717_s24, %s2435_s5 }
 0x473   :  { %p1723_p7 = pnand %p1721_p6, %p1718_p5 }
 0x475   :  { %1726 = shalt.err (!%p1723_p7)
}
 0x476   :  { %1264 = dma.vmem_to_hbm [thread:$0]  %s1262_s19, 16, %s2435_s5, [#allocation3]  }
 0x477   :  { %1727 = dma.done.wait [#allocation3], 16  }
 0x478   :  { %1728 = vsyncadd [#allocation3], 4294967280 }
 0x479   :  { %1268 = vsyncpa [#allocation3], 1 }

</bundles_post_ra>
